<compile_context>
chip_gen: v7x
topology: tpu7x:2x2x1
jax: 0.10.0
libtpu: 0.0.40
codegen_flags: <defaults>
</compile_context>

<pallas_src>
import jax
import jax.numpy as jnp
from jax.experimental import pallas as pl
from jax.experimental.pallas import tpu as pltpu


def autoencoder_kernel(x_ref, w1_ref, b1_ref, w2_ref, b2_ref, o_ref):
    # encoder: ReLU -> Linear -> ReLU   (MXU inputs bf16, accumulate f32)
    x = jnp.maximum(x_ref[...], 0.0).astype(jnp.bfloat16)
    h = jnp.dot(x, w1_ref[...], preferred_element_type=jnp.float32)
    h = jnp.maximum(h + b1_ref[...], 0.0)            # bias + ReLU in f32
    # decoder: Linear -> ReLU
    y = jnp.dot(h.astype(jnp.bfloat16), w2_ref[...],
                preferred_element_type=jnp.float32)
    o_ref[...] = jnp.maximum(y + b2_ref[...], 0.0).astype(o_ref.dtype)


_VMEM_BUDGET = 48 * 1024 * 1024   # headroom under v7x's 64 MiB physical VMEM


def _vmem_bytes(tile_b, input_size, latent, weight_bufs):
    """Rough per-step VMEM estimate for the chosen tiling."""
    act = 2 * 2 * tile_b * input_size * 4              # x + out tiles, double-buffered f32
    wgt = weight_bufs * 2 * input_size * latent * 2    # W1 + W2 in bf16
    bias = weight_bufs * (latent + input_size) * 4     # b1 + b2 in f32
    tmp = tile_b * (input_size * 2 + latent * 6)       # in-kernel bf16/f32 temporaries
    return act + wgt + bias + tmp


def _choose_tile_b(B, input_size, latent, max_tile=512):
    """Largest multiple-of-8 divisor of B (<= max_tile), preferring >= 2 grid steps."""
    if B <= 8:
        return B                                      # single full-extent block
    t = (min(max_tile, B) // 8) * 8
    while t >= 8:
        if (B % t == 0 and B // t >= 2
                and _vmem_bytes(t, input_size, latent, 1) <= _VMEM_BUDGET):
            return t
        t -= 8
    return B                                          # fall back: whole batch in one step


def autoencoder_forward(x, w1, b1, w2, b2, *, tile_b=None):
    """x: (B, input_size); w1: (input_size, latent); w2: (latent, input_size)."""
    B, input_size = x.shape
    latent = w1.shape[1]
    assert w1.shape == (input_size, latent)
    assert w2.shape == (latent, input_size)

    # MXU operands in bf16: ~2x MXU throughput and half the weight HBM bytes.
    w1_bf = w1.astype(jnp.bfloat16)
    w2_bf = w2.astype(jnp.bfloat16)
    b1_f = b1.reshape(1, latent).astype(jnp.float32)
    b2_f = b2.reshape(1, input_size).astype(jnp.float32)

    if tile_b is None:
        tile_b = _choose_tile_b(B, input_size, latent)
    assert B % tile_b == 0
    grid = (B // tile_b,)

    itemsize = jnp.dtype(x.dtype).itemsize
    cost = pl.CostEstimate(
        flops=4 * B * input_size * latent,            # two GEMMs, 2*M*N*K each
        transcendentals=0,
        bytes_accessed=(B * input_size * itemsize         # x
                        + B * input_size * itemsize       # out
                        + w1_bf.size * 2 + w2_bf.size * 2
                        + b1_f.size * 4 + b2_f.size * 4),
    )

    def build(single_buffer_weights):
        def const_spec(shape):
            if single_buffer_weights:
                # Constant index_map -> a second pipeline buffer is pure VMEM waste.
                return pl.BlockSpec(shape, lambda i: (0, 0),
                                    pipeline_mode=pl.Buffered(1))
            return pl.BlockSpec(shape, lambda i: (0, 0))

        weight_bufs = 1 if single_buffer_weights else 2
        vmem_limit = min(
            64 * 1024 * 1024,
            max(16 * 1024 * 1024,
                2 * _vmem_bytes(tile_b, input_size, latent, weight_bufs)))

        return pl.pallas_call(
            autoencoder_kernel,
            out_shape=jax.ShapeDtypeStruct((B, input_size), x.dtype),
            grid_spec=pltpu.PrefetchScalarGridSpec(
                num_scalar_prefetch=0,
                grid=grid,
                in_specs=[
                    pl.BlockSpec((tile_b, input_size), lambda i: (i, 0)),  # x tile
                    const_spec((input_size, latent)),                      # W1 (bf16)
                    const_spec((1, latent)),                               # b1 (f32)
                    const_spec((latent, input_size)),                      # W2 (bf16)
                    const_spec((1, input_size)),                           # b2 (f32)
                ],
                out_specs=pl.BlockSpec((tile_b, input_size), lambda i: (i, 0)),
            ),
            compiler_params=pltpu.CompilerParams(
                dimension_semantics=("parallel",),
                vmem_limit_bytes=vmem_limit,
            ),
            cost_estimate=cost,
        )

    try:
        return build(True)(x, w1_bf, b1_f, w2_bf, b2_f)
    except Exception:
        # Fallback for JAX versions without per-BlockSpec pipeline_mode support:
        # identical kernel, weights just default double-buffered (extra VMEM only).
        return build(False)(x, w1_bf, b1_f, w2_bf, b2_f)


def init_linear_params(key, in_features, out_features, dtype=jnp.float32):
    """Deterministic init mimicking torch.nn.Linear (uniform +/- 1/sqrt(in))."""
    kw, kb = jax.random.split(key)
    bound = 1.0 / (in_features ** 0.5)
    # Stored as (in, out) == torch weight (out, in) transposed.
    w = jax.random.uniform(kw, (in_features, out_features), dtype, -bound, bound)
    b = jax.random.uniform(kb, (1, out_features), dtype, -bound, bound)
    return w, b


def reference_forward_f32(x, w1, b1, w2, b2):
    h = jnp.maximum(jnp.maximum(x, 0.0) @ w1 + b1, 0.0)
    return jnp.maximum(h @ w2 + b2, 0.0)


def reference_forward_bf16(x, w1, b1, w2, b2):
    """Same mixed precision as the kernel (bf16 MXU inputs, f32 acc/bias/ReLU)."""
    xb = jnp.maximum(x, 0.0).astype(jnp.bfloat16)
    h = jnp.dot(xb, w1.astype(jnp.bfloat16), preferred_element_type=jnp.float32) + b1
    hb = jnp.maximum(h, 0.0).astype(jnp.bfloat16)
    y = jnp.dot(hb, w2.astype(jnp.bfloat16), preferred_element_type=jnp.float32) + b2
    return jnp.maximum(y, 0.0)


if __name__ == "__main__":
    batch = 512          # -> tile_b = 256, grid = (2,): feeds both v7x TensorCores
    input_size = 256     # multiple of 128 -> lane-dense input/output tiles
    latent_size = 128    # bottleneck; pick a multiple of 256 on v6e/v7x if free

    key = jax.random.PRNGKey(0)
    kx, k1, k2 = jax.random.split(key, 3)

    x = jax.random.normal(kx, (batch, input_size), jnp.float32)
    w1, b1 = init_linear_params(k1, input_size, latent_size)   # encoder Linear
    w2, b2 = init_linear_params(k2, latent_size, input_size)   # decoder Linear

    out = autoencoder_forward(x, w1, b1, w2, b2)
    out = jax.block_until_ready(out)
    assert out.shape == (batch, input_size)

    # Exact-math check against a reference using the kernel's mixed precision.
    ref_bf16 = reference_forward_bf16(x, w1, b1, w2, b2)
    assert jnp.allclose(out, ref_bf16, atol=1e-4, rtol=1e-4), float(
        jnp.max(jnp.abs(out - ref_bf16)))

    # Semantic check against the full-f32 PyTorch-equivalent forward.
    ref_f32 = reference_forward_f32(x, w1, b1, w2, b2)
    assert jnp.allclose(out, ref_f32, atol=5e-2, rtol=5e-2), float(
        jnp.max(jnp.abs(out - ref_f32)))

    print("KERNEL_OK")
</pallas_src>

<mosaic_0001>
module attributes {stable_mosaic.version = 11 : i64} {
  func.func @autoencoder_kernel(%arg0: i32, %arg1: memref<256x256xf32, #tpu.memory_space<vmem>>, %arg2: memref<256x128xbf16, #tpu.memory_space<vmem>>, %arg3: memref<1x128xf32, #tpu.memory_space<vmem>>, %arg4: memref<128x256xbf16, #tpu.memory_space<vmem>>, %arg5: memref<1x256xf32, #tpu.memory_space<vmem>>, %arg6: memref<256x256xf32, #tpu.memory_space<vmem>>) attributes {dimension_semantics = [#tpu.dimension_semantics<parallel>], iteration_bounds = array<i64: 2>, scalar_prefetch = 0 : i64, scratch_operands = 0 : i64, tpu.core_type = #tpu.core_type<tc>, window_params = [{transform_indices = @transform_0, window_bounds = array<i64: 256, 256>}, {pipeline_mode = #tpu.pipeline_mode<synchronous>, transform_indices = @transform_1, window_bounds = array<i64: 256, 128>}, {pipeline_mode = #tpu.pipeline_mode<synchronous>, transform_indices = @transform_2, window_bounds = array<i64: 1, 128>}, {pipeline_mode = #tpu.pipeline_mode<synchronous>, transform_indices = @transform_3, window_bounds = array<i64: 128, 256>}, {pipeline_mode = #tpu.pipeline_mode<synchronous>, transform_indices = @transform_4, window_bounds = array<i64: 1, 256>}, {transform_indices = @transform_5, window_bounds = array<i64: 256, 256>}]} {
    %c0 = arith.constant 0 : index
    %c0_0 = arith.constant 0 : index
    %0 = vector.load %arg1[%c0, %c0_0] : memref<256x256xf32, #tpu.memory_space<vmem>>, vector<256x256xf32>
    %cst = arith.constant 0.000000e+00 : f32
    %1 = vector.broadcast %cst : f32 to vector<256x256xf32>
    %2 = arith.maximumf %0, %1 : vector<256x256xf32>
    %3 = arith.truncf %2 : vector<256x256xf32> to vector<256x256xbf16>
    %c0_1 = arith.constant 0 : index
    %c0_2 = arith.constant 0 : index
    %4 = vector.load %arg2[%c0_1, %c0_2] : memref<256x128xbf16, #tpu.memory_space<vmem>>, vector<256x128xbf16>
    %cst_3 = arith.constant dense<0.000000e+00> : vector<256x128xf32>
    %5 = tpu.matmul %3, %4, %cst_3 {dimension_numbers = #tpu.dot_dimension_numbers<[1], [0], [0], [1], [0, 0, 1, 1], [], []>} : vector<256x256xbf16>, vector<256x128xbf16>, vector<256x128xf32> -> vector<256x128xf32>
    %c0_4 = arith.constant 0 : index
    %c0_5 = arith.constant 0 : index
    %6 = vector.load %arg3[%c0_4, %c0_5] : memref<1x128xf32, #tpu.memory_space<vmem>>, vector<1x128xf32>
    %7 = vector.broadcast %6 : vector<1x128xf32> to vector<256x128xf32>
    %8 = arith.addf %5, %7 : vector<256x128xf32>
    %cst_6 = arith.constant 0.000000e+00 : f32
    %9 = vector.broadcast %cst_6 : f32 to vector<256x128xf32>
    %10 = arith.maximumf %8, %9 : vector<256x128xf32>
    %11 = arith.truncf %10 : vector<256x128xf32> to vector<256x128xbf16>
    %c0_7 = arith.constant 0 : index
    %c0_8 = arith.constant 0 : index
    %12 = vector.load %arg4[%c0_7, %c0_8] : memref<128x256xbf16, #tpu.memory_space<vmem>>, vector<128x256xbf16>
    %cst_9 = arith.constant dense<0.000000e+00> : vector<256x256xf32>
    %13 = tpu.matmul %11, %12, %cst_9 {dimension_numbers = #tpu.dot_dimension_numbers<[1], [0], [0], [1], [0, 0, 1, 1], [], []>} : vector<256x128xbf16>, vector<128x256xbf16>, vector<256x256xf32> -> vector<256x256xf32>
    %c0_10 = arith.constant 0 : index
    %c0_11 = arith.constant 0 : index
    %14 = vector.load %arg5[%c0_10, %c0_11] : memref<1x256xf32, #tpu.memory_space<vmem>>, vector<1x256xf32>
    %15 = vector.broadcast %14 : vector<1x256xf32> to vector<256x256xf32>
    %16 = arith.addf %13, %15 : vector<256x256xf32>
    %cst_12 = arith.constant 0.000000e+00 : f32
    %17 = vector.broadcast %cst_12 : f32 to vector<256x256xf32>
    %18 = arith.maximumf %16, %17 : vector<256x256xf32>
    %c0_13 = arith.constant 0 : index
    %c0_14 = arith.constant 0 : index
    %19 = vector.load %arg6[%c0_13, %c0_14] : memref<256x256xf32, #tpu.memory_space<vmem>>, vector<256x256xf32>
    tpu.vector_store %arg6[%c0_13, %c0_14], %18 {strides = array<i32>} : memref<256x256xf32, #tpu.memory_space<vmem>>, vector<256x256xf32>,
    return
  }
  func.func @transform_0(%arg0: i32) -> (i32, i32) {
    %c0_i32 = arith.constant 0 : i32
    %c0_i32_0 = arith.constant 0 : i32
    return %arg0, %c0_i32 : i32, i32
  }
  func.func @transform_1(%arg0: i32) -> (i32, i32) {
    %c0_i32 = arith.constant 0 : i32
    %c0_i32_0 = arith.constant 0 : i32
    %c0_i32_1 = arith.constant 0 : i32
    return %c0_i32, %c0_i32_0 : i32, i32
  }
  func.func @transform_2(%arg0: i32) -> (i32, i32) {
    %c0_i32 = arith.constant 0 : i32
    %c0_i32_0 = arith.constant 0 : i32
    %c0_i32_1 = arith.constant 0 : i32
    return %c0_i32, %c0_i32_0 : i32, i32
  }
  func.func @transform_3(%arg0: i32) -> (i32, i32) {
    %c0_i32 = arith.constant 0 : i32
    %c0_i32_0 = arith.constant 0 : i32
    %c0_i32_1 = arith.constant 0 : i32
    return %c0_i32, %c0_i32_0 : i32, i32
  }
  func.func @transform_4(%arg0: i32) -> (i32, i32) {
    %c0_i32 = arith.constant 0 : i32
    %c0_i32_0 = arith.constant 0 : i32
    %c0_i32_1 = arith.constant 0 : i32
    return %c0_i32, %c0_i32_0 : i32, i32
  }
  func.func @transform_5(%arg0: i32) -> (i32, i32) {
    %c0_i32 = arith.constant 0 : i32
    %c0_i32_0 = arith.constant 0 : i32
    return %arg0, %c0_i32 : i32, i32
  }
}

module attributes {stable_mosaic.version = 11 : i64} {
  func.func @autoencoder_kernel(%arg0: i32, %arg1: memref<256x256xf32, #tpu.memory_space<vmem>>, %arg2: memref<256x128xbf16, #tpu.memory_space<vmem>>, %arg3: memref<1x128xf32, #tpu.memory_space<vmem>>, %arg4: memref<128x256xbf16, #tpu.memory_space<vmem>>, %arg5: memref<1x256xf32, #tpu.memory_space<vmem>>, %arg6: memref<256x256xf32, #tpu.memory_space<vmem>>) attributes {dimension_semantics = [#tpu.dimension_semantics<parallel>], iteration_bounds = array<i64: 2>, scalar_prefetch = 0 : i64, scratch_operands = 0 : i64, tpu.core_type = #tpu.core_type<tc>, window_params = [{transform_indices = @transform_0, window_bounds = array<i64: 256, 256>}, {pipeline_mode = #tpu.pipeline_mode<synchronous>, transform_indices = @transform_1, window_bounds = array<i64: 256, 128>}, {pipeline_mode = #tpu.pipeline_mode<synchronous>, transform_indices = @transform_2, window_bounds = array<i64: 1, 128>}, {pipeline_mode = #tpu.pipeline_mode<synchronous>, transform_indices = @transform_3, window_bounds = array<i64: 128, 256>}, {pipeline_mode = #tpu.pipeline_mode<synchronous>, transform_indices = @transform_4, window_bounds = array<i64: 1, 256>}, {transform_indices = @transform_5, window_bounds = array<i64: 256, 256>}]} {
    %c0 = arith.constant 0 : index
    %c0_0 = arith.constant 0 : index
    %0 = vector.load %arg1[%c0, %c0_0] : memref<256x256xf32, #tpu.memory_space<vmem>>, vector<256x256xf32>
    %cst = arith.constant 0.000000e+00 : f32
    %1 = vector.broadcast %cst : f32 to vector<256x256xf32>
    %2 = arith.maximumf %0, %1 : vector<256x256xf32>
    %3 = arith.truncf %2 : vector<256x256xf32> to vector<256x256xbf16>
    %c0_1 = arith.constant 0 : index
    %c0_2 = arith.constant 0 : index
    %4 = vector.load %arg2[%c0_1, %c0_2] : memref<256x128xbf16, #tpu.memory_space<vmem>>, vector<256x128xbf16>
    %cst_3 = arith.constant dense<0.000000e+00> : vector<256x128xf32>
    %5 = tpu.matmul %3, %4, %cst_3 {dimension_numbers = #tpu.dot_dimension_numbers<[1], [0], [0], [1], [0, 0, 1, 1], [], []>} : vector<256x256xbf16>, vector<256x128xbf16>, vector<256x128xf32> -> vector<256x128xf32>
    %c0_4 = arith.constant 0 : index
    %c0_5 = arith.constant 0 : index
    %6 = vector.load %arg3[%c0_4, %c0_5] : memref<1x128xf32, #tpu.memory_space<vmem>>, vector<1x128xf32>
    %7 = vector.broadcast %6 : vector<1x128xf32> to vector<256x128xf32>
    %8 = arith.addf %5, %7 : vector<256x128xf32>
    %cst_6 = arith.constant 0.000000e+00 : f32
    %9 = vector.broadcast %cst_6 : f32 to vector<256x128xf32>
    %10 = arith.maximumf %8, %9 : vector<256x128xf32>
    %11 = arith.truncf %10 : vector<256x128xf32> to vector<256x128xbf16>
    %c0_7 = arith.constant 0 : index
    %c0_8 = arith.constant 0 : index
    %12 = vector.load %arg4[%c0_7, %c0_8] : memref<128x256xbf16, #tpu.memory_space<vmem>>, vector<128x256xbf16>
    %cst_9 = arith.constant dense<0.000000e+00> : vector<256x256xf32>
    %13 = tpu.matmul %11, %12, %cst_9 {dimension_numbers = #tpu.dot_dimension_numbers<[1], [0], [0], [1], [0, 0, 1, 1], [], []>} : vector<256x128xbf16>, vector<128x256xbf16>, vector<256x256xf32> -> vector<256x256xf32>
    %c0_10 = arith.constant 0 : index
    %c0_11 = arith.constant 0 : index
    %14 = vector.load %arg5[%c0_10, %c0_11] : memref<1x256xf32, #tpu.memory_space<vmem>>, vector<1x256xf32>
    %15 = vector.broadcast %14 : vector<1x256xf32> to vector<256x256xf32>
    %16 = arith.addf %13, %15 : vector<256x256xf32>
    %cst_12 = arith.constant 0.000000e+00 : f32
    %17 = vector.broadcast %cst_12 : f32 to vector<256x256xf32>
    %18 = arith.maximumf %16, %17 : vector<256x256xf32>
    %c0_13 = arith.constant 0 : index
    %c0_14 = arith.constant 0 : index
    %19 = vector.load %arg6[%c0_13, %c0_14] : memref<256x256xf32, #tpu.memory_space<vmem>>, vector<256x256xf32>
    tpu.vector_store %arg6[%c0_13, %c0_14], %18 {strides = array<i32>} : memref<256x256xf32, #tpu.memory_space<vmem>>, vector<256x256xf32>,
    return
  }
  func.func @transform_0(%arg0: i32) -> (i32, i32) {
    %c0_i32 = arith.constant 0 : i32
    %c0_i32_0 = arith.constant 0 : i32
    return %arg0, %c0_i32 : i32, i32
  }
  func.func @transform_1(%arg0: i32) -> (i32, i32) {
    %c0_i32 = arith.constant 0 : i32
    %c0_i32_0 = arith.constant 0 : i32
    %c0_i32_1 = arith.constant 0 : i32
    return %c0_i32, %c0_i32_0 : i32, i32
  }
  func.func @transform_2(%arg0: i32) -> (i32, i32) {
    %c0_i32 = arith.constant 0 : i32
    %c0_i32_0 = arith.constant 0 : i32
    %c0_i32_1 = arith.constant 0 : i32
    return %c0_i32, %c0_i32_0 : i32, i32
  }
  func.func @transform_3(%arg0: i32) -> (i32, i32) {
    %c0_i32 = arith.constant 0 : i32
    %c0_i32_0 = arith.constant 0 : i32
    %c0_i32_1 = arith.constant 0 : i32
    return %c0_i32, %c0_i32_0 : i32, i32
  }
  func.func @transform_4(%arg0: i32) -> (i32, i32) {
    %c0_i32 = arith.constant 0 : i32
    %c0_i32_0 = arith.constant 0 : i32
    %c0_i32_1 = arith.constant 0 : i32
    return %c0_i32, %c0_i32_0 : i32, i32
  }
  func.func @transform_5(%arg0: i32) -> (i32, i32) {
    %c0_i32 = arith.constant 0 : i32
    %c0_i32_0 = arith.constant 0 : i32
    return %arg0, %c0_i32 : i32, i32
  }
}

</mosaic_0001>

<bundles_post_ra>
// kernel: tpu_custom_call.1
= control target key start
LH: loop header
LB: loop body
LE: loop exit
PB: predicated region body
PF: predicated region fallthrough
CT: control target
= control target key end

     0   :  { %10 = vsyncpa [#allocation3], 0  ;;  %s2297_s0 = inlined_call_operand.hbm [shape: f32[512,256], index: 0, kind: input, shape index: {}]   ;;  %s2298_s1 = inlined_call_operand.hbm [shape: bf16[256,128], index: 1, kind: input, shape index: {}]   ;;  %s2299_s2 = inlined_call_operand.vmem [shape: f32[1,128], index: 2, kind: input, shape index: {}]   ;;  %s2300_s3 = inlined_call_operand.hbm [shape: bf16[128,256], index: 3, kind: input, shape index: {}]   ;;  %s2301_s4 = inlined_call_operand.vmem [shape: f32[1,256], index: 4, kind: input, shape index: {}]   ;;  %s2302_s5 = inlined_call_operand.hbm [shape: f32[512,256], index: 5, kind: output, shape index: {}]  }
   0x1   :  { %12 = vsyncpa [#allocation3 + $0x1], 0 }
   0x2   :  { %13 = vsyncpa [#allocation6], 0 }
   0x3   :  { %14 = vsyncpa [#allocation4], 0 }
   0x4   :  { %16 = vsyncpa [#allocation4 + $0x1], 0  ;;  %s1802_s18 = smov 0   ;;  %s1804_s19 = smov 0  }
   0x5   :  { %s1806_s20 = smov 0   ;;  %s1808_s21 = smov 0  }
   0x6 LB: > { %s1823_s22 = sadd.s32 4294967295, %s1757_s21   ;;  %s1316_s23 = sadd.s32 4294967294, %s1757_s21   ;;  %s1757_s21 = sphi %s1808_s21, %s2322_s21   ;;  %s1753_s20 = sphi %s1806_s20, %s2321_s20   ;;  %s1749_s19 = sphi %s1804_s19, %s2320_s19   ;;  %s1745_s18 = sphi %s1802_s18, %s2319_s18  }
   0x7   : > { %p42_p0 = scmp.ne.s32.totalorder %s1749_s19, %s1745_s18  ;;  %p2303_p1 = scmp.eq.s32.totalorder %s1823_s22, 0 }
   0x8   : > { %p156_p3 = scmp.eq.s32.totalorder %s1316_s23, 1  ;;  %p1317_p5 = scmp.ge.s32.totalorder %s1757_s21, 1 }
   0x9   : > { %p1832_p4 = por %p2303_p1, %p42_p0  ;;  %p163_p7 = scmp.lt.s32.totalorder %s1757_s21, 3 }
   0xa   : > { %p1837_p6 = por %p156_p3, %p42_p0  ;;  %s1759_s27 = smov [#allocation5]  }
   0xb   : > { %s2306_s24 = scalar_select %p1832_p4, 1, 0 }
   0xc   : > { %s2307_s25 = scalar_select %p1837_p6, 1, 0 }
   0xd   : > { %p1842_p8 = pnand %p1317_p5, %p163_p7  ;;  %s175_s28 = sshll.u32 %s1759_s27, 4  ;;  %s1846_s28 = int_to_ptr.vmem [resolvable:$true] %s175_s28 }
   0xe   : > { %s1760_s30 = smov [#allocation7]   ;;  %s1601_s9 = scalar_lea.hbm %s2298_s1, 2048 }
   0xf   : > { %p1497_p9 = pneg %p1842_p8  ;;  %s191_s6 = sshll.u32 %s1760_s30, 4  ;;  %s1857_s6 = int_to_ptr.vmem [resolvable:$true] %s191_s6 }
  0x10   : > { %p1602_p12 = scmp.ne.s32.totalorder %s2298_s1, %s1601_s9  ;;  %p1608_p5 = scmp.lt.u32.totalorder %s1601_s9, %s2298_s1 }
  0x11   : > { %p1853_p11 = pnand %p1497_p9, %p2303_p1 }
  0x13   : > { %p1603_p13 = pneg %p1853_p11 }
  0x15   : > { %p1604_p0 = pnand %p1603_p13, %p1602_p12 }
  0x17   : > { %p1605_p3 = pneg %p1604_p0 }
  0x19   : > { %p1610_p7 = pnand %p1608_p5, %p1605_p3 }
  0x1b   : > { %1613 = shalt.err (!%p1610_p7)
}
  0x1c   : > { %s1614_s14 = scalar_lea.vmem %s1846_s28, 2048  ;;  %p1622_p2 = scmp.lt.s32.totalorder %s1846_s28, %s1846_s28 }
  0x1d   : > { %p1615_p9 = scmp.ne.s32.totalorder %s1846_s28, %s1614_s14  ;;  %p1623_p12 = scmp.lt.s32.totalorder %s1614_s14, %s1614_s14 }
  0x1f   : > { %p1617_p10 = pnand %p1615_p9, %p1603_p13  ;;  %p1624_p0 = por %p1623_p12, %p1622_p2 }
  0x21   : > { %p1618_p1 = pneg %p1617_p10 }
  0x23   : > { %p1625_p6 = pnand %p1624_p0, %p1618_p1 }
  0x25   : > { %1628 = shalt.err (!%p1625_p6)
}
  0x26   : > { %s1761_s15 = smov 64   ;;  %s1762_s16 = smov 4  }
  0x27   : > { %1500 = dma.hbm_to_vmem [thread:$0]  (!%p1853_p11), %s2298_s1, 2048, %s1846_s28, [#allocation6], %s1761_s15, %s1761_s15, %s1762_s16  }
  0x28   : > { %s1629_s7 = scalar_lea.hbm %s2300_s3, 2048 }
  0x29   : > { %p1630_p2 = scmp.ne.s32.totalorder %s2300_s3, %s1629_s7  ;;  %p1636_p10 = scmp.lt.u32.totalorder %s1629_s7, %s2300_s3 }
  0x2b   : > { %p1632_p1 = pnand %p1630_p2, %p1603_p13 }
  0x2d   : > { %p1633_p6 = pneg %p1632_p1 }
  0x2f   : > { %p1638_p3 = pnand %p1636_p10, %p1633_p6 }
  0x31   : > { %1641 = shalt.err (!%p1638_p3)
}
  0x32   : > { %s1642_s28 = scalar_lea.vmem %s1857_s6, 2048  ;;  %p1650_p12 = scmp.lt.s32.totalorder %s1857_s6, %s1857_s6 }
  0x33   : > { %p1643_p5 = scmp.ne.s32.totalorder %s1857_s6, %s1642_s28  ;;  %p1651_p0 = scmp.lt.s32.totalorder %s1642_s28, %s1642_s28 }
  0x35   : > { %p1645_p7 = pnand %p1643_p5, %p1603_p13  ;;  %p1652_p2 = por %p1651_p0, %p1650_p12 }
  0x37   : > { %p1646_p9 = pneg %p1645_p7 }
  0x39   : > { %p1653_p1 = pnand %p1652_p2, %p1646_p9 }
  0x3b   : > { %1656 = shalt.err (!%p1653_p1)
}
  0x3c   : > { %s1763_s12 = smov 128   ;;  %s1764_s13 = smov 8  }
  0x3d   : > { %1503 = dma.hbm_to_vmem [thread:$0]  (!%p1853_p11), %s2300_s3, 2048, %s1857_s6, [#allocation6], %s1763_s12, %s1763_s12, %s1764_s13  }
  0x3e   : > { %s1912_s16 = sadd.s32 1, %s1757_s21   ;;  %s29_s23 = sadd.s32 1, %s1753_s20 }
  0x3f   : > { %s26_s17 = ssub.s32 %s1757_s21, %s1912_s16  ;;  %p36_p6 = scmp.ne.s32.totalorder %s1753_s20, %s1749_s19 }
  0x40   : > { %p27_p13 = scmp.eq.s32.totalorder %s26_s17, 0  ;;  %p37_p10 = scmp.eq.s32.totalorder %s1757_s21, 0 }
  0x41   : > { %p2310_p5 = scmp.eq.s32.totalorder %s1823_s22, 1  ;;  %p1514_p9 = scmp.lt.s32.totalorder %s1757_s21, 2 }
  0x42   : > { %s1921_s27 = scalar_select %p27_p13, %s1753_s20, %s29_s23  }
  0x43   : > { %p38_p3 = por %p37_p10, %p36_p6  ;;  %p1925_p7 = por %p2310_p5, %p36_p6 }
  0x44   : > { %s208_s29 = sand.u32 1, %s1753_s20   ;;  %s1370_s6 = sshll.u32 %s1757_s21, 13 }
  0x45   : > { %s2311_s30 = scalar_select %p1925_p7, 1, 0 }
  0x46   : > { %s1321_s7 = sshll.u32 %s208_s29, 9  ;;  %s1935_s10 = scalar_lea.hbm %s2297_s0, %s1370_s6 }
  0x47   : > { %s212_s11 = scalar_lea.vmem [#allocation2], %s1321_s7  ;;  %p1939_p11 = pnand %p1514_p9, %p38_p3 }
  0x48   : > { %s220_s28 = sshll.u32 %s212_s11, 4  ;;  %s1943_s13 = scalar_lea.sflag [#allocation3], %s208_s29  ;;  %s1937_s28 = int_to_ptr.vmem [resolvable:$true] %s220_s28 }
  0x49   : > { %s1657_s14 = scalar_lea.hbm %s1935_s10, 8192  ;;  %p1659_p0 = pneg %p1939_p11 }
  0x4a   : > { %p1658_p12 = scmp.ne.s32.totalorder %s1935_s10, %s1657_s14  ;;  %s1662_s23 = scalar_lea.hbm %s2297_s0, 16384 }
  0x4b   : > { %p1663_p13 = scmp.lt.u32.totalorder %s1935_s10, %s2297_s0  ;;  %p1664_p6 = scmp.lt.u32.totalorder %s1662_s23, %s1657_s14 }
  0x4c   : > { %p1660_p2 = pnand %p1659_p0, %p1658_p12  ;;  %p1666_p3 = scmp.lt.u32.totalorder %s1657_s14, %s1935_s10 }
  0x4d   : > { %p1665_p10 = por %p1664_p6, %p1663_p13 }
  0x4e   : > { %p1661_p1 = pneg %p1660_p2 }
  0x4f   : > { %p1667_p5 = por %p1666_p3, %p1665_p10 }
  0x51   : > { %p1668_p9 = pnand %p1667_p5, %p1661_p1 }
  0x53   : > { %1671 = shalt.err (!%p1668_p9)
}
  0x54   : > { %s1672_s29 = scalar_lea.vmem %s1937_s28, 8192  ;;  %s1765_s8 = smov [#allocation2]  }
  0x55   : > { %p1673_p12 = scmp.ne.s32.totalorder %s1937_s28, %s1672_s29  ;;  %s1677_s9 = sshll.u32 %s1765_s8, 4  ;;  %s1678_s9 = int_to_ptr.vmem [resolvable:$false] %s1677_s9 }
  0x56   : > { %s1679_s11 = scalar_lea.vmem %s1678_s9, 16384  ;;  %p1680_p4 = scmp.lt.s32.totalorder %s1937_s28, %s1678_s9 }
  0x57   : > { %p1675_p2 = pnand %p1673_p12, %p1659_p0  ;;  %p1681_p13 = scmp.lt.s32.totalorder %s1679_s11, %s1672_s29 }
  0x59   : > { %p1676_p7 = pneg %p1675_p2  ;;  %p1682_p6 = por %p1681_p13, %p1680_p4 }
  0x5b   : > { %p1683_p10 = pnand %p1682_p6, %p1676_p7 }
  0x5d   : > { %1686 = shalt.err (!%p1683_p10)
}
  0x5e   : > { %s1766_s14 = smov 256   ;;  %s1767_s15 = smov 16  }
  0x5f   : > { %1507 = dma.hbm_to_vmem [thread:$0]  (!%p1939_p11), %s1935_s10, 8192, %s1937_s28, %s1943_s13, %s1766_s14, %s1766_s14, %s1767_s15  }
  0x60   : > { %232 = sbr.rel (%p1842_p8) target bundleno = 717 (0x2cd), region = 40  ;;  %s1974_s17 = sand.u32 (!%p1842_p8), 1, %s1749_s19  }
  0x61   : > { %s1326_s23 = sshll.u32 (!%p1842_p8), %s1974_s17, 9  ;;  %s235_s7 = scalar_lea.sflag (!%p1842_p8), [#allocation3], %s1974_s17 }
  0x62   : > { %s1980_s6 = scalar_lea.vmem (!%p1842_p8), [#allocation2], %s1326_s23  ;;  %p2313_p4 = scmp.ne.s32.totalorder (!%p1842_p8), %s2306_s24, 0 }
  0x67   : > { %1732 = dma.done.wait (%p2313_p4), %s235_s7, 8192  }
  0x68   : > { %1734 = vsyncadd (%p2313_p4), %s235_s7, 4294959104  ;;  %p2314_p7 = scmp.eq.s32.totalorder %s1823_s22, 0 }
  0x6a   : > { %1736 = dma.done.wait (%p2314_p7), [#allocation6], 4096   ;;  %p2315_p8 = pmov %p2314_p7 }
  0x6b   : > { %v1561_v0 = vld [vmem:[#allocation5 + $0x40] sm:$0xff]   ;;  %v1563_v2 = vld [vmem:[#allocation5 + $0x48] sm:$0xff]   ;;  %v1565_v4 = vld [vmem:[#allocation5 + $0x50] sm:$0xff]   ;;  %s2120_s12 = scalar_lea.vmem [#allocation8], %s1326_s23  ;;  %s1372_s13 = sshll.u32 %s1823_s22, 13 }
  0x6c   : > { %1738 = vsyncadd (%p2315_p8), [#allocation6], 4294963200  ;;  %v1562_v1 = vld [vmem:[#allocation5] sm:$0xff]   ;;  %1373 = vmatprep.subr.bf16.mxu0 %v1561_v0  ;;  %v1564_v3 = vld [vmem:[#allocation5 + $0x8] sm:$0xff]   ;;  %s1224_s29 = sshll.u32 %s2120_s12, 4  ;;  %s2248_s11 = scalar_lea.hbm %s2302_s5, %s1372_s13  ;;  %s2250_s29 = int_to_ptr.vmem [resolvable:$true] %s1224_s29 }
  0x6d   : > { %1374 = vmatpush3.bf16.msra.mxu0 %v1562_v1  ;;  %v1566_v5 = vld [vmem:[#allocation5 + $0x10] sm:$0xff]   ;;  %v1567_v6 = vld [vmem:[#allocation5 + $0x58] sm:$0xff]   ;;  %v1569_v8 = vld [vmem:[#allocation5 + $0x60] sm:$0xff]   ;;  %s1210_s22 = scalar_lea.sflag [#allocation4], %s1974_s17  ;;  %s1687_s14 = scalar_lea.vmem %s2250_s29, 8192 }
  0x6e   : > { %1375 = vmatprep.subr.bf16.mxu0 %v1563_v2  ;;  %v1568_v7 = vld [vmem:[#allocation5 + $0x18] sm:$0xff]   ;;  %v1570_v9 = vld [vmem:[#allocation5 + $0x20] sm:$0xff]   ;;  %v1571_v10 = vld [vmem:[#allocation5 + $0x68] sm:$0xff]   ;;  %p1688_p11 = scmp.ne.s32.totalorder %s2250_s29, %s1687_s14  ;;  %p2316_p0 = scmp.ne.s32.totalorder %s2311_s30, 0 }
  0x6f   : > { %v277_v11 = vld [vmem:[%s1980_s6 + $0x8] sm:$0xff]  ;;  %v279_v12 = vld [vmem:[%s1980_s6 + $0x18] sm:$0xff]  ;;  %v1573_v17 = vld [vmem:[#allocation5 + $0x70] sm:$0xff]   ;;  %s1769_s15 = smov [#allocation8]  }
  0x70   : > { %v341_v13 = vmax.f32 %v277_v11, 0.0  ;;  %v343_v14 = vmax.f32 %v279_v12, 0.0  ;;  %v1572_v15 = vld [vmem:[#allocation5 + $0x28] sm:$0xff]   ;;  %v1574_v18 = vld [vmem:[#allocation5 + $0x30] sm:$0xff]   ;;  %v276_v19 = vld [vmem:[%s1980_s6] sm:$0xff]  ;;  %p1689_p1 = pnand %p1688_p11, %p2316_p0  ;;  %s1691_s23 = sshll.u32 %s1769_s15, 4  ;;  %s1692_s23 = int_to_ptr.vmem [resolvable:$false] %s1691_s23 }
  0x71   : > { %1376 = vmatpush3.bf16.msra.mxu0 %v1564_v3  ;;  %v278_v20 = vld [vmem:[%s1980_s6 + $0x10] sm:$0xff]  ;;  %v1575_v21 = vld [vmem:[#allocation5 + $0x78] sm:$0xff]   ;;  %v281_v22 = vld [vmem:[%s1980_s6 + $0x28] sm:$0xff]  ;;  %v340_v24 = vmax.f32 %v276_v19, 0.0  ;;  %s1693_s7 = scalar_lea.vmem %s1692_s23, 16384  ;;  %p1694_p5 = scmp.lt.s32.totalorder %s2250_s29, %s1692_s23 }
  0x72   : > { %1377 = vmatprep.subr.bf16.mxu0 %v1565_v4  ;;  %v405_v16 = vpack.c.bf16 %v343_v14, %v341_v13  ;;  %v283_v23 = vld [vmem:[%s1980_s6 + $0x38] sm:$0xff]  ;;  %v342_v25 = vmax.f32 %v278_v20, 0.0  ;;  %v345_v27 = vmax.f32 %v281_v22, 0.0  ;;  %v280_v31 = vld [vmem:[%s1980_s6 + $0x20] sm:$0xff]  ;;  %v282_v32 = vld [vmem:[%s1980_s6 + $0x30] sm:$0xff]  ;;  %p1690_p3 = pneg %p1689_p1  ;;  %p1695_p9 = scmp.lt.s32.totalorder %s1693_s7, %s1687_s14 }
  0x73   : > { %v1576_v26 = vld [vmem:[#allocation5 + $0x38] sm:$0xff]   ;;  %v347_v28 = vmax.f32 %v283_v23, 0.0  ;;  %v285_v33 = vld [vmem:[%s1980_s6 + $0x48] sm:$0xff]  ;;  %v344_v35 = vmax.f32 %v280_v31, 0.0  ;;  %v346_v36 = vmax.f32 %v282_v32, 0.0  ;;  %v284_v39 = vld [vmem:[%s1980_s6 + $0x40] sm:$0xff] }
  0x74   : > { %603 = vmatprep.mubr.bf16.mxu0 %v405_v16  ;;  %v404_v29 = vpack.c.bf16 %v342_v25, %v340_v24  ;;  %v287_v34 = vld [vmem:[%s1980_s6 + $0x58] sm:$0xff]  ;;  %v349_v37 = vmax.f32 %v285_v33, 0.0  ;;  %v286_v41 = vld [vmem:[%s1980_s6 + $0x50] sm:$0xff]  ;;  %v1577_v42 = vld [vmem:[#allocation7 + $0x4] ss:$8 sps:$4 sm:$0xff]   ;;  %v348_v49 = vmax.f32 %v284_v39, 0.0  ;;  %p1696_p12 = por %p1695_p9, %p1694_p5 }
  0x75   : > { %1378 = vmatpush3.bf16.msra.mxu0 %v1566_v5  ;;  %v407_v30 = vpack.c.bf16 %v347_v28, %v345_v27  ;;  %v351_v38 = vmax.f32 %v287_v34, 0.0  ;;  %v406_v40 = vpack.c.bf16 %v346_v36, %v344_v35  ;;  %v1579_v43 = vld [vmem:[#allocation7] ss:$8 sps:$4 sm:$0xff]   ;;  %v291_v46 = vld [vmem:[%s1980_s6 + $0x78] sm:$0xff]  ;;  %888 = vmatprep.subr.bf16.mxu1 %v1577_v42  ;;  %v350_v50 = vmax.f32 %v286_v41, 0.0  ;;  %v290_v59 = vld [vmem:[%s1980_s6 + $0x70] sm:$0xff] }
  0x76   : > { %1379 = vmatprep.subr.bf16.mxu0 %v1567_v6  ;;  %v289_v45 = vld [vmem:[%s1980_s6 + $0x68] sm:$0xff]  ;;  %v1580_v47 = vld [vmem:[#allocation7 + $0x14] ss:$8 sps:$4 sm:$0xff]   ;;  %889 = vmatpush1.bf16.msra.mxu1 %v1579_v43  ;;  %v1582_v48 = vld [vmem:[#allocation7 + $0x10] ss:$8 sps:$4 sm:$0xff]   ;;  %v355_v53 = vmax.f32 %v291_v46, 0.0  ;;  %p1697_p2 = pnand %p1696_p12, %p1690_p3 }
  0x77   : > { %v409_v44 = vpack.c.bf16 %v351_v38, %v349_v37  ;;  %890 = vmatprep.subr.bf16.mxu1 %v1580_v47  ;;  %v1583_v51 = vld [vmem:[#allocation7 + $0x24] ss:$8 sps:$4 sm:$0xff]   ;;  %v353_v52 = vmax.f32 %v289_v45, 0.0  ;;  %v1585_v54 = vld [vmem:[#allocation7 + $0x20] ss:$8 sps:$4 sm:$0xff]   ;;  %v408_v55 = vpack.c.bf16 %v350_v50, %v348_v49  ;;  %v295_v61 = vld [vmem:[%s1980_s6 + $0x98] sm:$0xff] }
  0x78   : > { %v1586_v56 = vld [vmem:[#allocation7 + $0x34] ss:$8 sps:$4 sm:$0xff]   ;;  %v288_v58 = vld [vmem:[%s1980_s6 + $0x60] sm:$0xff]  ;;  %v293_v60 = vld [vmem:[%s1980_s6 + $0x88] sm:$0xff]  ;;  %v354_v0 = vmax.f32 %v290_v59, 0.0  ;;  %v359_v3 = vmax.f32 %v295_v61, 0.0 }
  0x79   : > { %1380 = vmatpush3.bf16.msra.mxu0 %v1568_v7  ;;  %v411_v57 = vpack.c.bf16 %v355_v53, %v353_v52  ;;  %v1588_v62 = vld [vmem:[#allocation7 + $0x30] ss:$8 sps:$4 sm:$0xff]   ;;  %v352_v63 = vmax.f32 %v288_v58, 0.0  ;;  %v1589_v1 = vld [vmem:[#allocation7 + $0x44] ss:$8 sps:$4 sm:$0xff]   ;;  %v357_v2 = vmax.f32 %v293_v60, 0.0 }
  0x7a   : > { %1381 = vmatprep.subr.bf16.mxu0 %v1569_v8  ;;  %891 = vmatpush1.bf16.msra.mxu1 %v1582_v48  ;;  %v1591_v4 = vld [vmem:[#allocation7 + $0x40] ss:$8 sps:$4 sm:$0xff]   ;;  %v294_v8 = vld [vmem:[%s1980_s6 + $0x90] sm:$0xff]  ;;  %v303_v20 = vld [vmem:[%s1980_s6 + $0xd8] sm:$0xff] }
  0x7b   : > { %892 = vmatprep.subr.bf16.mxu1 %v1583_v51  ;;  %v410_v5 = vpack.c.bf16 %v354_v0, %v352_v63  ;;  %v413_v6 = vpack.c.bf16 %v359_v3, %v357_v2  ;;  %v292_v7 = vld [vmem:[%s1980_s6 + $0x80] sm:$0xff]  ;;  %v358_v12 = vmax.f32 %v294_v8, 0.0  ;;  %v301_v19 = vld [vmem:[%s1980_s6 + $0xc8] sm:$0xff]  ;;  %v367_v24 = vmax.f32 %v303_v20, 0.0  ;;  %v302_v28 = vld [vmem:[%s1980_s6 + $0xd0] sm:$0xff] }
  0x7c   : > { %v356_v11 = vmax.f32 %v292_v7, 0.0  ;;  %v365_v23 = vmax.f32 %v301_v19, 0.0  ;;  %v300_v27 = vld [vmem:[%s1980_s6 + $0xc0] sm:$0xff]  ;;  %v366_v32 = vmax.f32 %v302_v28, 0.0  ;;  %v306_v38 = vld [vmem:[%s1980_s6 + $0xf0] sm:$0xff]  ;;  %v309_v39 = vld [vmem:[%s1980_s6 + $0x108] sm:$0xff] }
  0x7d   : > { %1382 = vmatpush3.bf16.msra.mxu0 %v1570_v9  ;;  %v297_v9 = vld [vmem:[%s1980_s6 + $0xa8] sm:$0xff]  ;;  %v364_v31 = vmax.f32 %v300_v27, 0.0  ;;  %v304_v37 = vld [vmem:[%s1980_s6 + $0xe0] sm:$0xff]  ;;  %v370_v42 = vmax.f32 %v306_v38, 0.0  ;;  %v373_v43 = vmax.f32 %v309_v39, 0.0  ;;  %v310_v48 = vld [vmem:[%s1980_s6 + $0x110] sm:$0xff] }
  0x7e   : > { %1383 = vmatprep.subr.bf16.mxu0 %v1571_v10  ;;  %893 = vmatpush1.bf16.msra.mxu1 %v1585_v54  ;;  %v299_v10 = vld [vmem:[%s1980_s6 + $0xb8] sm:$0xff]  ;;  %v361_v13 = vmax.f32 %v297_v9, 0.0  ;;  %v368_v41 = vmax.f32 %v304_v37, 0.0  ;;  %v308_v47 = vld [vmem:[%s1980_s6 + $0x100] sm:$0xff]  ;;  %v313_v49 = vld [vmem:[%s1980_s6 + $0x128] sm:$0xff]  ;;  %v374_v52 = vmax.f32 %v310_v48, 0.0 }
  0x7f   : > { %894 = vmatprep.subr.bf16.mxu1 %v1586_v56  ;;  %v363_v14 = vmax.f32 %v299_v10, 0.0  ;;  %v416_v35 = vpack.c.bf16 %v366_v32, %v364_v31  ;;  %v315_v50 = vld [vmem:[%s1980_s6 + $0x138] sm:$0xff]  ;;  %v372_v51 = vmax.f32 %v308_v47, 0.0  ;;  %v377_v53 = vmax.f32 %v313_v49, 0.0  ;;  %v314_v58 = vld [vmem:[%s1980_s6 + $0x130] sm:$0xff]  ;;  %v317_v59 = vld [vmem:[%s1980_s6 + $0x148] sm:$0xff] }
  0x80   : > { %v418_v45 = vpack.c.bf16 %v370_v42, %v368_v41  ;;  %v379_v54 = vmax.f32 %v315_v50, 0.0  ;;  %v319_v60 = vld [vmem:[%s1980_s6 + $0x158] sm:$0xff]  ;;  %v381_v63 = vmax.f32 %v317_v59, 0.0  ;;  %v316_v3 = vld [vmem:[%s1980_s6 + $0x140] sm:$0xff]  ;;  %v329_v28 = vld [vmem:[%s1980_s6 + $0x1a8] sm:$0xff] }
  0x81   : > { %1384 = vmatpush3.bf16.msra.mxu0 %v1572_v15  ;;  %v412_v15 = vpack.c.bf16 %v358_v12, %v356_v11  ;;  %v415_v16 = vpack.c.bf16 %v363_v14, %v361_v13  ;;  %v383_v0 = vmax.f32 %v319_v60, 0.0  ;;  %v380_v7 = vmax.f32 %v316_v3, 0.0  ;;  %v320_v13 = vld [vmem:[%s1980_s6 + $0x160] sm:$0xff]  ;;  %v322_v14 = vld [vmem:[%s1980_s6 + $0x170] sm:$0xff]  ;;  %v333_v41 = vld [vmem:[%s1980_s6 + $0x1c8] sm:$0xff] }
  0x82   : > { %1385 = vmatprep.subr.bf16.mxu0 %v1573_v17  ;;  %895 = vmatpush1.bf16.msra.mxu1 %v1588_v62  ;;  %v296_v17 = vld [vmem:[%s1980_s6 + $0xa0] sm:$0xff]  ;;  %v423_v56 = vpack.c.bf16 %v379_v54, %v377_v53  ;;  %v378_v62 = vmax.f32 %v314_v58, 0.0  ;;  %v335_v42 = vld [vmem:[%s1980_s6 + $0x1d8] sm:$0xff] }
  0x83   : > { %896 = vmatprep.subr.bf16.mxu1 %v1589_v1  ;;  %v425_v2 = vpack.c.bf16 %v383_v0, %v381_v63  ;;  %v1595_v27 = vld [vmem:[#allocation7 + $0x64] ss:$8 sps:$4 sm:$0xff]   ;;  %v399_v47 = vmax.f32 %v335_v42, 0.0  ;;  %v339_v53 = vld [vmem:[%s1980_s6 + $0x1f8] sm:$0xff] }
  0x84   : > { %v328_v39 = vld [vmem:[%s1980_s6 + $0x1a0] sm:$0xff] }
  0x85   : > { %1386 = vmatpush3.bf16.msra.mxu0 %v1574_v18  ;;  %v298_v18 = vld [vmem:[%s1980_s6 + $0xb0] sm:$0xff]  ;;  %v332_v50 = vld [vmem:[%s1980_s6 + $0x1c0] sm:$0xff] }
  0x86   : > { %1387 = vmatprep.subr.bf16.mxu0 %v1575_v21  ;;  %897 = vmatpush1.bf16.msra.mxu1 %v1591_v4  ;;  %v360_v21 = vmax.f32 %v296_v17, 0.0  ;;  %v362_v22 = vmax.f32 %v298_v18, 0.0  ;;  %v318_v4 = vld [vmem:[%s1980_s6 + $0x150] sm:$0xff]  ;;  %v384_v17 = vmax.f32 %v320_v13, 0.0  ;;  %v386_v18 = vmax.f32 %v322_v14, 0.0  ;;  %v336_v60 = vld [vmem:[%s1980_s6 + $0x1e0] sm:$0xff] }
  0x87   : > { %v382_v8 = vmax.f32 %v318_v4, 0.0  ;;  %v396_v54 = vmax.f32 %v332_v50, 0.0 }
  0x88   : > { %v414_v25 = vpack.c.bf16 %v362_v22, %v360_v21  ;;  %v1592_v21 = vld [vmem:[#allocation7 + $0x54] ss:$8 sps:$4 sm:$0xff]   ;;  %v1594_v22 = vld [vmem:[#allocation7 + $0x50] ss:$8 sps:$4 sm:$0xff]  }
  0x89   : > { %1388 = vmatpush3.bf16.msra.mxu0 %v1576_v26  ;;  %v417_v26 = vpack.c.bf16 %v367_v24, %v365_v23  ;;  %v424_v11 = vpack.c.bf16 %v382_v8, %v380_v7  ;;  %898 = vmatprep.subr.bf16.mxu1 %v1592_v21  ;;  %v426_v23 = vpack.c.bf16 %v386_v18, %v384_v17 }
  0x8a   : > { %899 = vmatpush1.bf16.msra.mxu1 %v1594_v22 }
  0x8b   : > { %900 = vmatprep.subr.bf16.mxu1 %v1595_v27 }
  0x8c   : > { %604 = vmatmul.mubr.bf16.vlgmr.msra.gmra.mrb[0].mxu0 %v404_v29  ;;  %v305_v29 = vld [vmem:[%s1980_s6 + $0xe8] sm:$0xff] }
  0x8d   : > { %611 = vmatprep.mubr.bf16.mxu0 %v407_v30  ;;  %v307_v30 = vld [vmem:[%s1980_s6 + $0xf8] sm:$0xff]  ;;  %v369_v33 = vmax.f32 %v305_v29, 0.0 }
  0x8e   : > { %v371_v34 = vmax.f32 %v307_v30, 0.0  ;;  %v331_v29 = vld [vmem:[%s1980_s6 + $0x1b8] sm:$0xff]  ;;  %v1597_v30 = vld [vmem:[#allocation7 + $0x60] ss:$8 sps:$4 sm:$0xff]  }
  0x8f   : > { %901 = vmatpush1.bf16.msra.mxu1 %v1597_v30 }
  0x90   : > { %v419_v36 = vpack.c.bf16 %v371_v34, %v369_v33  ;;  %v393_v33 = vmax.f32 %v329_v28, 0.0  ;;  %v395_v34 = vmax.f32 %v331_v29, 0.0 }
  0x92   : > { %v431_v38 = vpack.c.bf16 %v395_v34, %v393_v33 }
  0x94   : > { %612 = vmatmul.mubr.bf16.gmra.mrb[4].mxu0 %v406_v40  ;;  %v311_v40 = vld [vmem:[%s1980_s6 + $0x118] sm:$0xff] }
  0x95   : > { %619 = vmatprep.mubr.bf16.mxu0 %v409_v44  ;;  %v375_v44 = vmax.f32 %v311_v40, 0.0  ;;  %v330_v40 = vld [vmem:[%s1980_s6 + $0x1b0] sm:$0xff] }
  0x97   : > { %v421_v46 = vpack.c.bf16 %v375_v44, %v373_v43  ;;  %v1768_v43 = vmov 0   ;;  %v392_v44 = vmax.f32 %v328_v39, 0.0 }
  0x98   : > { %920 = vmatprep.mubr.bf16.mxu1 %v1768_v43 }
  0x9c   : > { %620 = vmatmul.mubr.bf16.gmra.mrb[8].mxu0 %v408_v55  ;;  %v420_v55 = vpack.c.bf16 %v374_v52, %v372_v51  ;;  %v334_v51 = vld [vmem:[%s1980_s6 + $0x1d0] sm:$0xff]  ;;  %v337_v52 = vld [vmem:[%s1980_s6 + $0x1e8] sm:$0xff] }
  0x9d   : > { %627 = vmatprep.mubr.bf16.mxu0 %v411_v57  ;;  %v312_v57 = vld [vmem:[%s1980_s6 + $0x120] sm:$0xff] }
  0x9e   : > { %v376_v61 = vmax.f32 %v312_v57, 0.0  ;;  %v403_v57 = vmax.f32 %v339_v53, 0.0 }
  0xa0   : > { %v422_v1 = vpack.c.bf16 %v378_v62, %v376_v61  ;;  %v338_v61 = vld [vmem:[%s1980_s6 + $0x1f0] sm:$0xff]  ;;  %v400_v62 = vmax.f32 %v336_v60, 0.0 }
  0xa1   : > { %v402_v63 = vmax.f32 %v338_v61, 0.0 }
  0xa3   : > { %v434_v0 = vpack.c.bf16 %v402_v63, %v400_v62 }
  0xa4   : > { %628 = vmatmul.mubr.bf16.gmra.mrb[12].mxu0 %v410_v5  ;;  %v321_v5 = vld [vmem:[%s1980_s6 + $0x168] sm:$0xff] }
  0xa5   : > { %635 = vmatprep.mubr.bf16.mxu0 %v413_v6  ;;  %v323_v6 = vld [vmem:[%s1980_s6 + $0x178] sm:$0xff]  ;;  %v385_v9 = vmax.f32 %v321_v5, 0.0 }
  0xa6   : > { %v387_v10 = vmax.f32 %v323_v6, 0.0 }
  0xa8   : > { %v427_v12 = vpack.c.bf16 %v387_v10, %v385_v9 }
  0xac   : > { %636 = vmatmul.mubr.bf16.gmra.mrb[16].mxu0 %v412_v15  ;;  %v325_v15 = vld [vmem:[%s1980_s6 + $0x188] sm:$0xff] }
  0xad   : > { %643 = vmatprep.mubr.bf16.mxu0 %v415_v16  ;;  %v327_v16 = vld [vmem:[%s1980_s6 + $0x198] sm:$0xff]  ;;  %v389_v19 = vmax.f32 %v325_v15, 0.0 }
  0xae   : > { %v391_v20 = vmax.f32 %v327_v16, 0.0 }
  0xb0   : > { %v429_v24 = vpack.c.bf16 %v391_v20, %v389_v19 }
  0xb4   : > { %644 = vmatmul.mubr.bf16.gmra.mrb[20].mxu0 %v414_v25  ;;  %v324_v25 = vld [vmem:[%s1980_s6 + $0x180] sm:$0xff] }
  0xb5   : > { %651 = vmatprep.mubr.bf16.mxu0 %v417_v26  ;;  %v326_v26 = vld [vmem:[%s1980_s6 + $0x190] sm:$0xff]  ;;  %v388_v31 = vmax.f32 %v324_v25, 0.0 }
  0xb6   : > { %v390_v32 = vmax.f32 %v326_v26, 0.0 }
  0xb8   : > { %v428_v37 = vpack.c.bf16 %v390_v32, %v388_v31 }
  0xbc   : > { %652 = vmatmul.mubr.bf16.gmra.mrb[24].mxu0 %v416_v35  ;;  %v1598_v35 = vld [vmem:[#allocation7 + $0x74] ss:$8 sps:$4 sm:$0xff]  }
  0xbd   : > { %659 = vmatprep.mubr.bf16.mxu0 %v419_v36  ;;  %v1600_v36 = vld [vmem:[#allocation7 + $0x70] ss:$8 sps:$4 sm:$0xff]   ;;  %902 = vmatprep.subr.bf16.mxu1 %v1598_v35 }
  0xbe   : > { %903 = vmatpush1.bf16.msra.mxu1 %v1600_v36 }
  0xc4   : > { %660 = vmatmul.mubr.bf16.gmra.mrb[28].mxu0 %v418_v45  ;;  %v394_v45 = vmax.f32 %v330_v40, 0.0 }
  0xc5   : > { %667 = vmatprep.mubr.bf16.mxu0 %v421_v46  ;;  %v397_v46 = vmax.f32 %v333_v41, 0.0 }
  0xc6   : > { %v430_v48 = vpack.c.bf16 %v394_v45, %v392_v44 }
  0xc7   : > { %v433_v49 = vpack.c.bf16 %v399_v47, %v397_v46 }
  0xcc   : > { %668 = vmatmul.mubr.bf16.gmra.mrb[32].mxu0 %v420_v55  ;;  %v398_v55 = vmax.f32 %v334_v51, 0.0 }
  0xcd   : > { %675 = vmatprep.mubr.bf16.mxu0 %v423_v56  ;;  %v401_v56 = vmax.f32 %v337_v52, 0.0 }
  0xce   : > { %v432_v58 = vpack.c.bf16 %v398_v55, %v396_v54 }
  0xcf   : > { %v435_v59 = vpack.c.bf16 %v403_v57, %v401_v56 }
  0xd4   : > { %676 = vmatmul.mubr.bf16.gmra.mrb[36].mxu0 %v422_v1 }
  0xd5   : > { %683 = vmatprep.mubr.bf16.mxu0 %v425_v2  ;;  %v2058_v2 = vld [vmem:[%s2299_s2] ss:$0 sm:$0xff] }
  0xdc   : > { %684 = vmatmul.mubr.bf16.gmra.mrb[40].mxu0 %v424_v11 }
  0xdd   : > { %691 = vmatprep.mubr.bf16.mxu0 %v427_v12 }
  0xe4   : > { %692 = vmatmul.mubr.bf16.gmra.mrb[44].mxu0 %v426_v23 }
  0xe5   : > { %699 = vmatprep.mubr.bf16.mxu0 %v429_v24 }
  0xec   : > { %700 = vmatmul.mubr.bf16.gmra.mrb[48].mxu0 %v428_v37 }
  0xed   : > { %707 = vmatprep.mubr.bf16.mxu0 %v431_v38 }
  0xf4   : > { %708 = vmatmul.mubr.bf16.gmra.mrb[52].mxu0 %v430_v48 }
  0xf5   : > { %715 = vmatprep.mubr.bf16.mxu0 %v433_v49 }
  0xfc   : > { %716 = vmatmul.mubr.bf16.gmra.mrb[56].mxu0 %v432_v58 }
  0xfd   : > { %723 = vmatprep.mubr.bf16.mxu0 %v435_v59 }
 0x104   : > { %724 = vmatmul.mubr.bf16.gmra.mrb[60].mxu0 %v434_v0 }
 0x15f   : > { %v1389_v1 = vpop.f32.mrb[0].mxu0 }
 0x160   : > { %v1390_v3 = vpop.f32.mrb[1].mxu0 }
 0x161   : > { %v1391_v4 = vadd.f32 %v1390_v3, %v1389_v1  ;;  %v1392_v5 = vpop.f32.mrb[2].mxu0 }
 0x162   : > { %v1393_v6 = vpop.f32.mrb[3].mxu0 }
 0x163   : > { %v606_v7 = vadd.f32 %v1391_v4, %v2058_v2  ;;  %v1394_v8 = vadd.f32 %v1393_v6, %v1392_v5 }
 0x165   : > { %v609_v9 = vadd.f32 %v1394_v8, %v2058_v2  ;;  %v732_v10 = vmax.f32 %v606_v7, 0.0 }
 0x167   : > { %v733_v11 = vmax.f32 %v609_v9, 0.0  ;;  %v1395_v12 = vpop.f32.mrb[4].mxu0 }
 0x168   : > { %v1396_v13 = vpop.f32.mrb[5].mxu0 }
 0x169   : > { %v1397_v14 = vadd.f32 %v1396_v13, %v1395_v12  ;;  %v1398_v15 = vpop.f32.mrb[6].mxu0  ;;  %v764_v16 = vpack.c.bf16 %v733_v11, %v732_v10 }
 0x16a   : > { %v1399_v17 = vpop.f32.mrb[7].mxu0 }
 0x16b   : > { %v614_v18 = vadd.f32 %v1397_v14, %v2058_v2  ;;  %v1400_v19 = vadd.f32 %v1399_v17, %v1398_v15  ;;  %921 = vmatmul.mubr.bf16.vlgmr.msra.gmra.mrb[0].mxu1 %v764_v16 }
 0x16c   : > { %930 = vmatprep.mubr.bf16.mxu1 %v1768_v43 }
 0x16d   : > { %v617_v20 = vadd.f32 %v1400_v19, %v2058_v2  ;;  %v734_v21 = vmax.f32 %v614_v18, 0.0 }
 0x16f   : > { %v735_v22 = vmax.f32 %v617_v20, 0.0  ;;  %v1401_v23 = vpop.f32.mrb[8].mxu0 }
 0x170   : > { %v1402_v24 = vpop.f32.mrb[9].mxu0 }
 0x171   : > { %v1403_v25 = vadd.f32 %v1402_v24, %v1401_v23  ;;  %v1404_v26 = vpop.f32.mrb[10].mxu0  ;;  %v765_v27 = vpack.c.bf16 %v735_v22, %v734_v21 }
 0x172   : > { %v1405_v28 = vpop.f32.mrb[11].mxu0 }
 0x173   : > { %v622_v29 = vadd.f32 %v1403_v25, %v2058_v2  ;;  %v1406_v30 = vadd.f32 %v1405_v28, %v1404_v26  ;;  %931 = vmatmul.mubr.bf16.gmra.mrb[4].mxu1 %v765_v27 }
 0x174   : > { %940 = vmatprep.mubr.bf16.mxu1 %v1768_v43 }
 0x175   : > { %v625_v31 = vadd.f32 %v1406_v30, %v2058_v2  ;;  %v736_v32 = vmax.f32 %v622_v29, 0.0 }
 0x177   : > { %v737_v33 = vmax.f32 %v625_v31, 0.0  ;;  %v1407_v34 = vpop.f32.mrb[12].mxu0 }
 0x178   : > { %v1408_v35 = vpop.f32.mrb[13].mxu0 }
 0x179   : > { %v1409_v36 = vadd.f32 %v1408_v35, %v1407_v34  ;;  %v1410_v37 = vpop.f32.mrb[14].mxu0  ;;  %v766_v38 = vpack.c.bf16 %v737_v33, %v736_v32 }
 0x17a   : > { %v1411_v39 = vpop.f32.mrb[15].mxu0 }
 0x17b   : > { %v630_v40 = vadd.f32 %v1409_v36, %v2058_v2  ;;  %v1412_v41 = vadd.f32 %v1411_v39, %v1410_v37  ;;  %941 = vmatmul.mubr.bf16.gmra.mrb[8].mxu1 %v766_v38 }
 0x17c   : > { %950 = vmatprep.mubr.bf16.mxu1 %v1768_v43 }
 0x17d   : > { %v633_v42 = vadd.f32 %v1412_v41, %v2058_v2  ;;  %v738_v44 = vmax.f32 %v630_v40, 0.0 }
 0x17f   : > { %v739_v45 = vmax.f32 %v633_v42, 0.0  ;;  %v1413_v46 = vpop.f32.mrb[16].mxu0 }
 0x180   : > { %v1414_v47 = vpop.f32.mrb[17].mxu0 }
 0x181   : > { %v1415_v48 = vadd.f32 %v1414_v47, %v1413_v46  ;;  %v1416_v49 = vpop.f32.mrb[18].mxu0  ;;  %v767_v50 = vpack.c.bf16 %v739_v45, %v738_v44 }
 0x182   : > { %v1417_v51 = vpop.f32.mrb[19].mxu0 }
 0x183   : > { %v638_v52 = vadd.f32 %v1415_v48, %v2058_v2  ;;  %v1418_v53 = vadd.f32 %v1417_v51, %v1416_v49  ;;  %951 = vmatmul.mubr.bf16.gmra.mrb[12].mxu1 %v767_v50 }
 0x184   : > { %960 = vmatprep.mubr.bf16.mxu1 %v1768_v43 }
 0x185   : > { %v641_v54 = vadd.f32 %v1418_v53, %v2058_v2  ;;  %v740_v55 = vmax.f32 %v638_v52, 0.0 }
 0x187   : > { %v741_v56 = vmax.f32 %v641_v54, 0.0  ;;  %v1419_v57 = vpop.f32.mrb[20].mxu0 }
 0x188   : > { %v1420_v58 = vpop.f32.mrb[21].mxu0 }
 0x189   : > { %v1421_v59 = vadd.f32 %v1420_v58, %v1419_v57  ;;  %v1422_v60 = vpop.f32.mrb[22].mxu0  ;;  %v768_v61 = vpack.c.bf16 %v741_v56, %v740_v55 }
 0x18a   : > { %v1423_v62 = vpop.f32.mrb[23].mxu0 }
 0x18b   : > { %v646_v63 = vadd.f32 %v1421_v59, %v2058_v2  ;;  %v1424_v0 = vadd.f32 %v1423_v62, %v1422_v60  ;;  %961 = vmatmul.mubr.bf16.gmra.mrb[16].mxu1 %v768_v61 }
 0x18c   : > { %970 = vmatprep.mubr.bf16.mxu1 %v1768_v43 }
 0x18d   : > { %v649_v1 = vadd.f32 %v1424_v0, %v2058_v2  ;;  %v742_v3 = vmax.f32 %v646_v63, 0.0 }
 0x18f   : > { %v743_v4 = vmax.f32 %v649_v1, 0.0  ;;  %v1425_v5 = vpop.f32.mrb[24].mxu0 }
 0x190   : > { %v1426_v6 = vpop.f32.mrb[25].mxu0 }
 0x191   : > { %v1427_v7 = vadd.f32 %v1426_v6, %v1425_v5  ;;  %v1428_v8 = vpop.f32.mrb[26].mxu0  ;;  %v769_v9 = vpack.c.bf16 %v743_v4, %v742_v3 }
 0x192   : > { %v1429_v10 = vpop.f32.mrb[27].mxu0 }
 0x193   : > { %v654_v11 = vadd.f32 %v1427_v7, %v2058_v2  ;;  %v1430_v12 = vadd.f32 %v1429_v10, %v1428_v8  ;;  %971 = vmatmul.mubr.bf16.gmra.mrb[20].mxu1 %v769_v9 }
 0x194   : > { %980 = vmatprep.mubr.bf16.mxu1 %v1768_v43 }
 0x195   : > { %v657_v13 = vadd.f32 %v1430_v12, %v2058_v2  ;;  %v744_v14 = vmax.f32 %v654_v11, 0.0 }
 0x197   : > { %v745_v15 = vmax.f32 %v657_v13, 0.0  ;;  %v1431_v16 = vpop.f32.mrb[28].mxu0 }
 0x198   : > { %v1432_v17 = vpop.f32.mrb[29].mxu0 }
 0x199   : > { %v1433_v18 = vadd.f32 %v1432_v17, %v1431_v16  ;;  %v1434_v19 = vpop.f32.mrb[30].mxu0  ;;  %v770_v20 = vpack.c.bf16 %v745_v15, %v744_v14 }
 0x19a   : > { %v1435_v21 = vpop.f32.mrb[31].mxu0 }
 0x19b   : > { %v662_v22 = vadd.f32 %v1433_v18, %v2058_v2  ;;  %v1436_v23 = vadd.f32 %v1435_v21, %v1434_v19  ;;  %981 = vmatmul.mubr.bf16.gmra.mrb[24].mxu1 %v770_v20 }
 0x19c   : > { %990 = vmatprep.mubr.bf16.mxu1 %v1768_v43 }
 0x19d   : > { %v665_v24 = vadd.f32 %v1436_v23, %v2058_v2  ;;  %v746_v25 = vmax.f32 %v662_v22, 0.0 }
 0x19f   : > { %v747_v26 = vmax.f32 %v665_v24, 0.0  ;;  %v1437_v27 = vpop.f32.mrb[32].mxu0 }
 0x1a0   : > { %v1438_v28 = vpop.f32.mrb[33].mxu0 }
 0x1a1   : > { %v1439_v29 = vadd.f32 %v1438_v28, %v1437_v27  ;;  %v1440_v30 = vpop.f32.mrb[34].mxu0  ;;  %v771_v31 = vpack.c.bf16 %v747_v26, %v746_v25 }
 0x1a2   : > { %v1441_v32 = vpop.f32.mrb[35].mxu0 }
 0x1a3   : > { %v670_v33 = vadd.f32 %v1439_v29, %v2058_v2  ;;  %v1442_v34 = vadd.f32 %v1441_v32, %v1440_v30  ;;  %991 = vmatmul.mubr.bf16.gmra.mrb[28].mxu1 %v771_v31 }
 0x1a4   : > { %1000 = vmatprep.mubr.bf16.mxu1 %v1768_v43 }
 0x1a5   : > { %v673_v35 = vadd.f32 %v1442_v34, %v2058_v2  ;;  %v748_v36 = vmax.f32 %v670_v33, 0.0 }
 0x1a7   : > { %v749_v37 = vmax.f32 %v673_v35, 0.0  ;;  %v1443_v38 = vpop.f32.mrb[36].mxu0 }
 0x1a8   : > { %v1444_v39 = vpop.f32.mrb[37].mxu0 }
 0x1a9   : > { %v1445_v40 = vadd.f32 %v1444_v39, %v1443_v38  ;;  %v1446_v41 = vpop.f32.mrb[38].mxu0  ;;  %v772_v42 = vpack.c.bf16 %v749_v37, %v748_v36 }
 0x1aa   : > { %v1447_v44 = vpop.f32.mrb[39].mxu0 }
 0x1ab   : > { %v678_v45 = vadd.f32 %v1445_v40, %v2058_v2  ;;  %v1448_v46 = vadd.f32 %v1447_v44, %v1446_v41  ;;  %1001 = vmatmul.mubr.bf16.gmra.mrb[32].mxu1 %v772_v42 }
 0x1ac   : > { %1010 = vmatprep.mubr.bf16.mxu1 %v1768_v43 }
 0x1ad   : > { %v681_v47 = vadd.f32 %v1448_v46, %v2058_v2  ;;  %v750_v48 = vmax.f32 %v678_v45, 0.0 }
 0x1af   : > { %v751_v49 = vmax.f32 %v681_v47, 0.0  ;;  %v1449_v50 = vpop.f32.mrb[40].mxu0 }
 0x1b0   : > { %v1450_v51 = vpop.f32.mrb[41].mxu0 }
 0x1b1   : > { %v1451_v52 = vadd.f32 %v1450_v51, %v1449_v50  ;;  %v1452_v53 = vpop.f32.mrb[42].mxu0  ;;  %v773_v54 = vpack.c.bf16 %v751_v49, %v750_v48 }
 0x1b2   : > { %v1453_v55 = vpop.f32.mrb[43].mxu0 }
 0x1b3   : > { %v686_v56 = vadd.f32 %v1451_v52, %v2058_v2  ;;  %v1454_v57 = vadd.f32 %v1453_v55, %v1452_v53  ;;  %1011 = vmatmul.mubr.bf16.gmra.mrb[36].mxu1 %v773_v54  ;;  %v798_v55 = vlaneseq }
 0x1b4   : > { %1020 = vmatprep.mubr.bf16.mxu1 %v1768_v43 }
 0x1b5   : > { %v689_v58 = vadd.f32 %v1454_v57, %v2058_v2  ;;  %v752_v59 = vmax.f32 %v686_v56, 0.0  ;;  %v799_v56 = vshrl.u32 %v798_v55, 7 }
 0x1b7   : > { %v753_v60 = vmax.f32 %v689_v58, 0.0  ;;  %v1455_v61 = vpop.f32.mrb[44].mxu0  ;;  %v800_v57 = vsub.s32 0, %v799_v56  ;;  %v796_v58 = vld [vmem:[%s2301_s4] sm:$0x3] }
 0x1b8   : > { %v1456_v62 = vpop.f32.mrb[45].mxu0 }
 0x1b9   : > { %v1457_v63 = vadd.f32 %v1456_v62, %v1455_v61  ;;  %v1458_v0 = vpop.f32.mrb[46].mxu0  ;;  %v774_v1 = vpack.c.bf16 %v753_v60, %v752_v59  ;;  %v804_v59 = vsub.s32 1, %v799_v56  ;;  %v2110_v60 = vrot.slane %v796_v58, %v800_v57 }
 0x1ba   : > { %v1459_v3 = vpop.f32.mrb[47].mxu0 }
 0x1bb   : > { %v694_v4 = vadd.f32 %v1457_v63, %v2058_v2  ;;  %v1460_v5 = vadd.f32 %v1459_v3, %v1458_v0  ;;  %1021 = vmatmul.mubr.bf16.gmra.mrb[40].mxu1 %v774_v1  ;;  %v2112_v61 = vrot.slane %v796_v58, %v804_v59 }
 0x1bc   : > { %1030 = vmatprep.mubr.bf16.mxu1 %v1768_v43 }
 0x1bd   : > { %v697_v6 = vadd.f32 %v1460_v5, %v2058_v2  ;;  %v754_v7 = vmax.f32 %v694_v4, 0.0 }
 0x1bf   : > { %v755_v8 = vmax.f32 %v697_v6, 0.0  ;;  %v1461_v9 = vpop.f32.mrb[48].mxu0 }
 0x1c0   : > { %v1462_v10 = vpop.f32.mrb[49].mxu0 }
 0x1c1   : > { %v1463_v11 = vadd.f32 %v1462_v10, %v1461_v9  ;;  %v1464_v12 = vpop.f32.mrb[50].mxu0  ;;  %v775_v13 = vpack.c.bf16 %v755_v8, %v754_v7 }
 0x1c2   : > { %v1465_v14 = vpop.f32.mrb[51].mxu0 }
 0x1c3   : > { %v702_v15 = vadd.f32 %v1463_v11, %v2058_v2  ;;  %v1466_v16 = vadd.f32 %v1465_v14, %v1464_v12  ;;  %1031 = vmatmul.mubr.bf16.gmra.mrb[44].mxu1 %v775_v13 }
 0x1c4   : > { %1040 = vmatprep.mubr.bf16.mxu1 %v1768_v43 }
 0x1c5   : > { %v705_v17 = vadd.f32 %v1466_v16, %v2058_v2  ;;  %v756_v18 = vmax.f32 %v702_v15, 0.0 }
 0x1c7   : > { %v757_v19 = vmax.f32 %v705_v17, 0.0  ;;  %v1467_v20 = vpop.f32.mrb[52].mxu0 }
 0x1c8   : > { %v1468_v21 = vpop.f32.mrb[53].mxu0 }
 0x1c9   : > { %v1469_v22 = vadd.f32 %v1468_v21, %v1467_v20  ;;  %v1470_v23 = vpop.f32.mrb[54].mxu0  ;;  %v776_v24 = vpack.c.bf16 %v757_v19, %v756_v18 }
 0x1ca   : > { %v1471_v25 = vpop.f32.mrb[55].mxu0 }
 0x1cb   : > { %v710_v26 = vadd.f32 %v1469_v22, %v2058_v2  ;;  %v1472_v27 = vadd.f32 %v1471_v25, %v1470_v23  ;;  %1041 = vmatmul.mubr.bf16.gmra.mrb[48].mxu1 %v776_v24 }
 0x1cc   : > { %1050 = vmatprep.mubr.bf16.mxu1 %v1768_v43 }
 0x1cd   : > { %v713_v28 = vadd.f32 %v1472_v27, %v2058_v2  ;;  %v758_v29 = vmax.f32 %v710_v26, 0.0 }
 0x1cf   : > { %v759_v30 = vmax.f32 %v713_v28, 0.0  ;;  %v1473_v31 = vpop.f32.mrb[56].mxu0 }
 0x1d0   : > { %v1474_v32 = vpop.f32.mrb[57].mxu0 }
 0x1d1   : > { %v1475_v33 = vadd.f32 %v1474_v32, %v1473_v31  ;;  %v1476_v34 = vpop.f32.mrb[58].mxu0  ;;  %v777_v35 = vpack.c.bf16 %v759_v30, %v758_v29 }
 0x1d2   : > { %v1477_v36 = vpop.f32.mrb[59].mxu0 }
 0x1d3   : > { %v718_v37 = vadd.f32 %v1475_v33, %v2058_v2  ;;  %v1478_v38 = vadd.f32 %v1477_v36, %v1476_v34  ;;  %1051 = vmatmul.mubr.bf16.gmra.mrb[52].mxu1 %v777_v35 }
 0x1d4   : > { %1060 = vmatprep.mubr.bf16.mxu1 %v1768_v43 }
 0x1d5   : > { %v721_v39 = vadd.f32 %v1478_v38, %v2058_v2  ;;  %v760_v40 = vmax.f32 %v718_v37, 0.0 }
 0x1d7   : > { %v761_v41 = vmax.f32 %v721_v39, 0.0  ;;  %v1479_v42 = vpop.f32.mrb[60].mxu0 }
 0x1d8   : > { %v1480_v44 = vpop.f32.mrb[61].mxu0 }
 0x1d9   : > { %v1481_v45 = vadd.f32 %v1480_v44, %v1479_v42  ;;  %v1482_v46 = vpop.f32.mrb[62].mxu0  ;;  %v778_v47 = vpack.c.bf16 %v761_v41, %v760_v40 }
 0x1da   : > { %v1483_v48 = vpop.f32.mrb[63].mxu0 }
 0x1db   : > { %v726_v49 = vadd.f32 %v1481_v45, %v2058_v2  ;;  %v1484_v50 = vadd.f32 %v1483_v48, %v1482_v46  ;;  %1061 = vmatmul.mubr.bf16.gmra.mrb[56].mxu1 %v778_v47 }
 0x1dc   : > { %1070 = vmatprep.mubr.bf16.mxu1 %v1768_v43 }
 0x1dd   : > { %v729_v51 = vadd.f32 %v1484_v50, %v2058_v2  ;;  %v762_v52 = vmax.f32 %v726_v49, 0.0 }
 0x1df   : > { %v763_v53 = vmax.f32 %v729_v51, 0.0 }
 0x1e1   : > { %v779_v54 = vpack.c.bf16 %v763_v53, %v762_v52 }
 0x1e3   : > { %1071 = vmatmul.mubr.bf16.gmra.mrb[60].mxu1 %v779_v54 }
 0x23e   : > { %v922_v43 = vpop.f32.mrb[0].mxu1 }
 0x23f   : > { %v923_v2 = vadd.f32 %v922_v43, %v2110_v60  ;;  %v924_v62 = vpop.f32.mrb[1].mxu1 }
 0x240   : > { %v925_v63 = vadd.f32 %v924_v62, %v2112_v61  ;;  %v926_v0 = vpop.f32.mrb[2].mxu1 }
 0x241   : > { %v1081_v1 = vmax.f32 %v923_v2, 0.0  ;;  %v927_v3 = vadd.f32 %v926_v0, %v2110_v60  ;;  %v928_v4 = vpop.f32.mrb[3].mxu1 }
 0x242   : > { %v1082_v5 = vmax.f32 %v925_v63, 0.0  ;;  %v929_v6 = vadd.f32 %v928_v4, %v2112_v61 }
 0x243   : > { %1145 = vst [vmem:[%s2120_s12] sm:$0xff] %v1081_v1  ;;  %v1083_v7 = vmax.f32 %v927_v3, 0.0 }
 0x244   : > { %1146 = vst [vmem:[%s2120_s12 + $0x8] sm:$0xff] %v1082_v5  ;;  %v1084_v8 = vmax.f32 %v929_v6, 0.0 }
 0x245   : > { %1147 = vst [vmem:[%s2120_s12 + $0x10] sm:$0xff] %v1083_v7 }
 0x246   : > { %1148 = vst [vmem:[%s2120_s12 + $0x18] sm:$0xff] %v1084_v8  ;;  %v932_v9 = vpop.f32.mrb[4].mxu1 }
 0x247   : > { %v933_v10 = vadd.f32 %v932_v9, %v2110_v60  ;;  %v934_v11 = vpop.f32.mrb[5].mxu1 }
 0x248   : > { %v935_v12 = vadd.f32 %v934_v11, %v2112_v61  ;;  %v936_v13 = vpop.f32.mrb[6].mxu1 }
 0x249   : > { %v1085_v14 = vmax.f32 %v933_v10, 0.0  ;;  %v937_v15 = vadd.f32 %v936_v13, %v2110_v60  ;;  %v938_v16 = vpop.f32.mrb[7].mxu1 }
 0x24a   : > { %v1086_v17 = vmax.f32 %v935_v12, 0.0  ;;  %v939_v18 = vadd.f32 %v938_v16, %v2112_v61 }
 0x24b   : > { %1149 = vst [vmem:[%s2120_s12 + $0x20] sm:$0xff] %v1085_v14  ;;  %v1087_v19 = vmax.f32 %v937_v15, 0.0 }
 0x24c   : > { %1150 = vst [vmem:[%s2120_s12 + $0x28] sm:$0xff] %v1086_v17  ;;  %v1088_v20 = vmax.f32 %v939_v18, 0.0 }
 0x24d   : > { %1151 = vst [vmem:[%s2120_s12 + $0x30] sm:$0xff] %v1087_v19 }
 0x24e   : > { %1152 = vst [vmem:[%s2120_s12 + $0x38] sm:$0xff] %v1088_v20  ;;  %v942_v21 = vpop.f32.mrb[8].mxu1 }
 0x24f   : > { %v943_v22 = vadd.f32 %v942_v21, %v2110_v60  ;;  %v944_v23 = vpop.f32.mrb[9].mxu1 }
 0x250   : > { %v945_v24 = vadd.f32 %v944_v23, %v2112_v61  ;;  %v946_v25 = vpop.f32.mrb[10].mxu1 }
 0x251   : > { %v1089_v26 = vmax.f32 %v943_v22, 0.0  ;;  %v947_v27 = vadd.f32 %v946_v25, %v2110_v60  ;;  %v948_v28 = vpop.f32.mrb[11].mxu1 }
 0x252   : > { %v1090_v29 = vmax.f32 %v945_v24, 0.0  ;;  %v949_v30 = vadd.f32 %v948_v28, %v2112_v61 }
 0x253   : > { %1153 = vst [vmem:[%s2120_s12 + $0x40] sm:$0xff] %v1089_v26  ;;  %v1091_v31 = vmax.f32 %v947_v27, 0.0 }
 0x254   : > { %1154 = vst [vmem:[%s2120_s12 + $0x48] sm:$0xff] %v1090_v29  ;;  %v1092_v32 = vmax.f32 %v949_v30, 0.0 }
 0x255   : > { %1155 = vst [vmem:[%s2120_s12 + $0x50] sm:$0xff] %v1091_v31 }
 0x256   : > { %1156 = vst [vmem:[%s2120_s12 + $0x58] sm:$0xff] %v1092_v32  ;;  %v952_v33 = vpop.f32.mrb[12].mxu1 }
 0x257   : > { %v953_v34 = vadd.f32 %v952_v33, %v2110_v60  ;;  %v954_v35 = vpop.f32.mrb[13].mxu1 }
 0x258   : > { %v955_v36 = vadd.f32 %v954_v35, %v2112_v61  ;;  %v956_v37 = vpop.f32.mrb[14].mxu1 }
 0x259   : > { %v1093_v38 = vmax.f32 %v953_v34, 0.0  ;;  %v957_v39 = vadd.f32 %v956_v37, %v2110_v60  ;;  %v958_v40 = vpop.f32.mrb[15].mxu1 }
 0x25a   : > { %v1094_v41 = vmax.f32 %v955_v36, 0.0  ;;  %v959_v42 = vadd.f32 %v958_v40, %v2112_v61 }
 0x25b   : > { %1157 = vst [vmem:[%s2120_s12 + $0x60] sm:$0xff] %v1093_v38  ;;  %v1095_v44 = vmax.f32 %v957_v39, 0.0 }
 0x25c   : > { %1158 = vst [vmem:[%s2120_s12 + $0x68] sm:$0xff] %v1094_v41  ;;  %v1096_v45 = vmax.f32 %v959_v42, 0.0 }
 0x25d   : > { %1159 = vst [vmem:[%s2120_s12 + $0x70] sm:$0xff] %v1095_v44 }
 0x25e   : > { %1160 = vst [vmem:[%s2120_s12 + $0x78] sm:$0xff] %v1096_v45  ;;  %v962_v46 = vpop.f32.mrb[16].mxu1 }
 0x25f   : > { %v963_v47 = vadd.f32 %v962_v46, %v2110_v60  ;;  %v964_v48 = vpop.f32.mrb[17].mxu1 }
 0x260   : > { %v965_v49 = vadd.f32 %v964_v48, %v2112_v61  ;;  %v966_v50 = vpop.f32.mrb[18].mxu1 }
 0x261   : > { %v1097_v51 = vmax.f32 %v963_v47, 0.0  ;;  %v967_v52 = vadd.f32 %v966_v50, %v2110_v60  ;;  %v968_v53 = vpop.f32.mrb[19].mxu1 }
 0x262   : > { %v1098_v54 = vmax.f32 %v965_v49, 0.0  ;;  %v969_v55 = vadd.f32 %v968_v53, %v2112_v61 }
 0x263   : > { %1161 = vst [vmem:[%s2120_s12 + $0x80] sm:$0xff] %v1097_v51  ;;  %v1099_v56 = vmax.f32 %v967_v52, 0.0 }
 0x264   : > { %1162 = vst [vmem:[%s2120_s12 + $0x88] sm:$0xff] %v1098_v54  ;;  %v1100_v57 = vmax.f32 %v969_v55, 0.0 }
 0x265   : > { %1163 = vst [vmem:[%s2120_s12 + $0x90] sm:$0xff] %v1099_v56 }
 0x266   : > { %1164 = vst [vmem:[%s2120_s12 + $0x98] sm:$0xff] %v1100_v57  ;;  %v972_v58 = vpop.f32.mrb[20].mxu1 }
 0x267   : > { %v973_v59 = vadd.f32 %v972_v58, %v2110_v60  ;;  %v974_v43 = vpop.f32.mrb[21].mxu1 }
 0x268   : > { %v975_v2 = vadd.f32 %v974_v43, %v2112_v61  ;;  %v976_v62 = vpop.f32.mrb[22].mxu1 }
 0x269   : > { %v1101_v63 = vmax.f32 %v973_v59, 0.0  ;;  %v977_v0 = vadd.f32 %v976_v62, %v2110_v60  ;;  %v978_v1 = vpop.f32.mrb[23].mxu1 }
 0x26a   : > { %v1102_v3 = vmax.f32 %v975_v2, 0.0  ;;  %v979_v4 = vadd.f32 %v978_v1, %v2112_v61 }
 0x26b   : > { %1165 = vst [vmem:[%s2120_s12 + $0xa0] sm:$0xff] %v1101_v63  ;;  %v1103_v5 = vmax.f32 %v977_v0, 0.0 }
 0x26c   : > { %1166 = vst [vmem:[%s2120_s12 + $0xa8] sm:$0xff] %v1102_v3  ;;  %v1104_v6 = vmax.f32 %v979_v4, 0.0 }
 0x26d   : > { %1167 = vst [vmem:[%s2120_s12 + $0xb0] sm:$0xff] %v1103_v5 }
 0x26e   : > { %1168 = vst [vmem:[%s2120_s12 + $0xb8] sm:$0xff] %v1104_v6  ;;  %v982_v7 = vpop.f32.mrb[24].mxu1 }
 0x26f   : > { %v983_v8 = vadd.f32 %v982_v7, %v2110_v60  ;;  %v984_v9 = vpop.f32.mrb[25].mxu1 }
 0x270   : > { %v985_v10 = vadd.f32 %v984_v9, %v2112_v61  ;;  %v986_v11 = vpop.f32.mrb[26].mxu1 }
 0x271   : > { %v1105_v12 = vmax.f32 %v983_v8, 0.0  ;;  %v987_v13 = vadd.f32 %v986_v11, %v2110_v60  ;;  %v988_v14 = vpop.f32.mrb[27].mxu1 }
 0x272   : > { %v1106_v15 = vmax.f32 %v985_v10, 0.0  ;;  %v989_v16 = vadd.f32 %v988_v14, %v2112_v61 }
 0x273   : > { %1169 = vst [vmem:[%s2120_s12 + $0xc0] sm:$0xff] %v1105_v12  ;;  %v1107_v17 = vmax.f32 %v987_v13, 0.0 }
 0x274   : > { %1170 = vst [vmem:[%s2120_s12 + $0xc8] sm:$0xff] %v1106_v15  ;;  %v1108_v18 = vmax.f32 %v989_v16, 0.0 }
 0x275   : > { %1171 = vst [vmem:[%s2120_s12 + $0xd0] sm:$0xff] %v1107_v17 }
 0x276   : > { %1172 = vst [vmem:[%s2120_s12 + $0xd8] sm:$0xff] %v1108_v18  ;;  %v992_v19 = vpop.f32.mrb[28].mxu1 }
 0x277   : > { %v993_v20 = vadd.f32 %v992_v19, %v2110_v60  ;;  %v994_v21 = vpop.f32.mrb[29].mxu1 }
 0x278   : > { %v995_v22 = vadd.f32 %v994_v21, %v2112_v61  ;;  %v996_v23 = vpop.f32.mrb[30].mxu1 }
 0x279   : > { %v1109_v24 = vmax.f32 %v993_v20, 0.0  ;;  %v997_v25 = vadd.f32 %v996_v23, %v2110_v60  ;;  %v998_v26 = vpop.f32.mrb[31].mxu1 }
 0x27a   : > { %v1110_v27 = vmax.f32 %v995_v22, 0.0  ;;  %v999_v28 = vadd.f32 %v998_v26, %v2112_v61 }
 0x27b   : > { %1173 = vst [vmem:[%s2120_s12 + $0xe0] sm:$0xff] %v1109_v24  ;;  %v1111_v29 = vmax.f32 %v997_v25, 0.0 }
 0x27c   : > { %1174 = vst [vmem:[%s2120_s12 + $0xe8] sm:$0xff] %v1110_v27  ;;  %v1112_v30 = vmax.f32 %v999_v28, 0.0 }
 0x27d   : > { %1175 = vst [vmem:[%s2120_s12 + $0xf0] sm:$0xff] %v1111_v29 }
 0x27e   : > { %1176 = vst [vmem:[%s2120_s12 + $0xf8] sm:$0xff] %v1112_v30  ;;  %v1002_v31 = vpop.f32.mrb[32].mxu1 }
 0x27f   : > { %v1003_v32 = vadd.f32 %v1002_v31, %v2110_v60  ;;  %v1004_v33 = vpop.f32.mrb[33].mxu1 }
 0x280   : > { %v1005_v34 = vadd.f32 %v1004_v33, %v2112_v61  ;;  %v1006_v35 = vpop.f32.mrb[34].mxu1 }
 0x281   : > { %v1113_v36 = vmax.f32 %v1003_v32, 0.0  ;;  %v1007_v37 = vadd.f32 %v1006_v35, %v2110_v60  ;;  %v1008_v38 = vpop.f32.mrb[35].mxu1 }
 0x282   : > { %v1114_v39 = vmax.f32 %v1005_v34, 0.0  ;;  %v1009_v40 = vadd.f32 %v1008_v38, %v2112_v61 }
 0x283   : > { %1177 = vst [vmem:[%s2120_s12 + $0x100] sm:$0xff] %v1113_v36  ;;  %v1115_v41 = vmax.f32 %v1007_v37, 0.0 }
 0x284   : > { %1178 = vst [vmem:[%s2120_s12 + $0x108] sm:$0xff] %v1114_v39  ;;  %v1116_v42 = vmax.f32 %v1009_v40, 0.0 }
 0x285   : > { %1179 = vst [vmem:[%s2120_s12 + $0x110] sm:$0xff] %v1115_v41 }
 0x286   : > { %1180 = vst [vmem:[%s2120_s12 + $0x118] sm:$0xff] %v1116_v42  ;;  %v1012_v44 = vpop.f32.mrb[36].mxu1 }
 0x287   : > { %v1013_v45 = vadd.f32 %v1012_v44, %v2110_v60  ;;  %v1014_v46 = vpop.f32.mrb[37].mxu1 }
 0x288   : > { %v1015_v47 = vadd.f32 %v1014_v46, %v2112_v61  ;;  %v1016_v48 = vpop.f32.mrb[38].mxu1 }
 0x289   : > { %v1117_v49 = vmax.f32 %v1013_v45, 0.0  ;;  %v1017_v50 = vadd.f32 %v1016_v48, %v2110_v60  ;;  %v1018_v51 = vpop.f32.mrb[39].mxu1 }
 0x28a   : > { %v1118_v52 = vmax.f32 %v1015_v47, 0.0  ;;  %v1019_v53 = vadd.f32 %v1018_v51, %v2112_v61 }
 0x28b   : > { %1181 = vst [vmem:[%s2120_s12 + $0x120] sm:$0xff] %v1117_v49  ;;  %v1119_v54 = vmax.f32 %v1017_v50, 0.0 }
 0x28c   : > { %1182 = vst [vmem:[%s2120_s12 + $0x128] sm:$0xff] %v1118_v52  ;;  %v1120_v55 = vmax.f32 %v1019_v53, 0.0 }
 0x28d   : > { %1183 = vst [vmem:[%s2120_s12 + $0x130] sm:$0xff] %v1119_v54 }
 0x28e   : > { %1184 = vst [vmem:[%s2120_s12 + $0x138] sm:$0xff] %v1120_v55  ;;  %v1022_v56 = vpop.f32.mrb[40].mxu1 }
 0x28f   : > { %v1023_v57 = vadd.f32 %v1022_v56, %v2110_v60  ;;  %v1024_v58 = vpop.f32.mrb[41].mxu1 }
 0x290   : > { %v1025_v59 = vadd.f32 %v1024_v58, %v2112_v61  ;;  %v1026_v43 = vpop.f32.mrb[42].mxu1 }
 0x291   : > { %v1121_v2 = vmax.f32 %v1023_v57, 0.0  ;;  %v1027_v62 = vadd.f32 %v1026_v43, %v2110_v60  ;;  %v1028_v63 = vpop.f32.mrb[43].mxu1 }
 0x292   : > { %v1122_v0 = vmax.f32 %v1025_v59, 0.0  ;;  %v1029_v1 = vadd.f32 %v1028_v63, %v2112_v61 }
 0x293   : > { %1185 = vst [vmem:[%s2120_s12 + $0x140] sm:$0xff] %v1121_v2  ;;  %v1123_v3 = vmax.f32 %v1027_v62, 0.0 }
 0x294   : > { %1186 = vst [vmem:[%s2120_s12 + $0x148] sm:$0xff] %v1122_v0  ;;  %v1124_v4 = vmax.f32 %v1029_v1, 0.0 }
 0x295   : > { %1187 = vst [vmem:[%s2120_s12 + $0x150] sm:$0xff] %v1123_v3 }
 0x296   : > { %1188 = vst [vmem:[%s2120_s12 + $0x158] sm:$0xff] %v1124_v4  ;;  %v1032_v5 = vpop.f32.mrb[44].mxu1 }
 0x297   : > { %v1033_v6 = vadd.f32 %v1032_v5, %v2110_v60  ;;  %v1034_v7 = vpop.f32.mrb[45].mxu1 }
 0x298   : > { %v1035_v8 = vadd.f32 %v1034_v7, %v2112_v61  ;;  %v1036_v9 = vpop.f32.mrb[46].mxu1 }
 0x299   : > { %v1125_v10 = vmax.f32 %v1033_v6, 0.0  ;;  %v1037_v11 = vadd.f32 %v1036_v9, %v2110_v60  ;;  %v1038_v12 = vpop.f32.mrb[47].mxu1 }
 0x29a   : > { %v1126_v13 = vmax.f32 %v1035_v8, 0.0  ;;  %v1039_v14 = vadd.f32 %v1038_v12, %v2112_v61 }
 0x29b   : > { %1189 = vst [vmem:[%s2120_s12 + $0x160] sm:$0xff] %v1125_v10  ;;  %v1127_v15 = vmax.f32 %v1037_v11, 0.0 }
 0x29c   : > { %1190 = vst [vmem:[%s2120_s12 + $0x168] sm:$0xff] %v1126_v13  ;;  %v1128_v16 = vmax.f32 %v1039_v14, 0.0 }
 0x29d   : > { %1191 = vst [vmem:[%s2120_s12 + $0x170] sm:$0xff] %v1127_v15 }
 0x29e   : > { %1192 = vst [vmem:[%s2120_s12 + $0x178] sm:$0xff] %v1128_v16  ;;  %v1042_v17 = vpop.f32.mrb[48].mxu1 }
 0x29f   : > { %v1043_v18 = vadd.f32 %v1042_v17, %v2110_v60  ;;  %v1044_v19 = vpop.f32.mrb[49].mxu1 }
 0x2a0   : > { %v1045_v20 = vadd.f32 %v1044_v19, %v2112_v61  ;;  %v1046_v21 = vpop.f32.mrb[50].mxu1 }
 0x2a1   : > { %v1129_v22 = vmax.f32 %v1043_v18, 0.0  ;;  %v1047_v23 = vadd.f32 %v1046_v21, %v2110_v60  ;;  %v1048_v24 = vpop.f32.mrb[51].mxu1 }
 0x2a2   : > { %v1130_v25 = vmax.f32 %v1045_v20, 0.0  ;;  %v1049_v26 = vadd.f32 %v1048_v24, %v2112_v61 }
 0x2a3   : > { %1193 = vst [vmem:[%s2120_s12 + $0x180] sm:$0xff] %v1129_v22  ;;  %v1131_v27 = vmax.f32 %v1047_v23, 0.0 }
 0x2a4   : > { %1194 = vst [vmem:[%s2120_s12 + $0x188] sm:$0xff] %v1130_v25  ;;  %v1132_v28 = vmax.f32 %v1049_v26, 0.0 }
 0x2a5   : > { %1195 = vst [vmem:[%s2120_s12 + $0x190] sm:$0xff] %v1131_v27 }
 0x2a6   : > { %1196 = vst [vmem:[%s2120_s12 + $0x198] sm:$0xff] %v1132_v28  ;;  %v1052_v29 = vpop.f32.mrb[52].mxu1 }
 0x2a7   : > { %v1053_v30 = vadd.f32 %v1052_v29, %v2110_v60  ;;  %v1054_v31 = vpop.f32.mrb[53].mxu1 }
 0x2a8   : > { %v1055_v32 = vadd.f32 %v1054_v31, %v2112_v61  ;;  %v1056_v33 = vpop.f32.mrb[54].mxu1 }
 0x2a9   : > { %v1133_v34 = vmax.f32 %v1053_v30, 0.0  ;;  %v1057_v35 = vadd.f32 %v1056_v33, %v2110_v60  ;;  %v1058_v36 = vpop.f32.mrb[55].mxu1 }
 0x2aa   : > { %v1134_v37 = vmax.f32 %v1055_v32, 0.0  ;;  %v1059_v38 = vadd.f32 %v1058_v36, %v2112_v61 }
 0x2ab   : > { %1197 = vst [vmem:[%s2120_s12 + $0x1a0] sm:$0xff] %v1133_v34  ;;  %v1135_v39 = vmax.f32 %v1057_v35, 0.0 }
 0x2ac   : > { %1198 = vst [vmem:[%s2120_s12 + $0x1a8] sm:$0xff] %v1134_v37  ;;  %v1136_v40 = vmax.f32 %v1059_v38, 0.0 }
 0x2ad   : > { %1199 = vst [vmem:[%s2120_s12 + $0x1b0] sm:$0xff] %v1135_v39 }
 0x2ae   : > { %1200 = vst [vmem:[%s2120_s12 + $0x1b8] sm:$0xff] %v1136_v40  ;;  %v1062_v41 = vpop.f32.mrb[56].mxu1 }
 0x2af   : > { %v1063_v42 = vadd.f32 %v1062_v41, %v2110_v60  ;;  %v1064_v44 = vpop.f32.mrb[57].mxu1 }
 0x2b0   : > { %v1065_v45 = vadd.f32 %v1064_v44, %v2112_v61  ;;  %v1066_v46 = vpop.f32.mrb[58].mxu1 }
 0x2b1   : > { %v1137_v47 = vmax.f32 %v1063_v42, 0.0  ;;  %v1067_v48 = vadd.f32 %v1066_v46, %v2110_v60  ;;  %v1068_v49 = vpop.f32.mrb[59].mxu1 }
 0x2b2   : > { %v1138_v50 = vmax.f32 %v1065_v45, 0.0  ;;  %v1069_v51 = vadd.f32 %v1068_v49, %v2112_v61 }
 0x2b3   : > { %1201 = vst [vmem:[%s2120_s12 + $0x1c0] sm:$0xff] %v1137_v47  ;;  %v1139_v52 = vmax.f32 %v1067_v48, 0.0 }
 0x2b4   : > { %1202 = vst [vmem:[%s2120_s12 + $0x1c8] sm:$0xff] %v1138_v50  ;;  %v1140_v53 = vmax.f32 %v1069_v51, 0.0 }
 0x2b5   : > { %1203 = vst [vmem:[%s2120_s12 + $0x1d0] sm:$0xff] %v1139_v52 }
 0x2b6   : > { %1204 = vst [vmem:[%s2120_s12 + $0x1d8] sm:$0xff] %v1140_v53  ;;  %v1072_v54 = vpop.f32.mrb[60].mxu1 }
 0x2b7   : > { %v1073_v55 = vadd.f32 %v1072_v54, %v2110_v60  ;;  %v1074_v56 = vpop.f32.mrb[61].mxu1 }
 0x2b8   : > { %v1075_v57 = vadd.f32 %v1074_v56, %v2112_v61  ;;  %v1076_v58 = vpop.f32.mrb[62].mxu1 }
 0x2b9   : > { %v1141_v59 = vmax.f32 %v1073_v55, 0.0  ;;  %v1077_v43 = vadd.f32 %v1076_v58, %v2110_v60  ;;  %v1078_v2 = vpop.f32.mrb[63].mxu1 }
 0x2ba   : > { %v1142_v62 = vmax.f32 %v1075_v57, 0.0  ;;  %v1079_v63 = vadd.f32 %v1078_v2, %v2112_v61 }
 0x2bb   : > { %1205 = vst [vmem:[%s2120_s12 + $0x1e0] sm:$0xff] %v1141_v59  ;;  %v1143_v0 = vmax.f32 %v1077_v43, 0.0 }
 0x2bc   : > { %1206 = vst [vmem:[%s2120_s12 + $0x1e8] sm:$0xff] %v1142_v62  ;;  %v1144_v1 = vmax.f32 %v1079_v63, 0.0 }
 0x2bd   : > { %1207 = vst [vmem:[%s2120_s12 + $0x1f0] sm:$0xff] %v1143_v0 }
 0x2be   : > { %1208 = vst [vmem:[%s2120_s12 + $0x1f8] sm:$0xff] %v1144_v1 }
 0x2bf   : > { %1700 = shalt.err (!%p1697_p2)
}
 0x2c0   : > { %s1701_s6 = scalar_lea.hbm %s2248_s11, 8192  ;;  %s1705_s10 = scalar_lea.hbm %s2302_s5, 16384 }
 0x2c1   : > { %p1702_p13 = scmp.ne.s32.totalorder %s2248_s11, %s1701_s6  ;;  %p1706_p4 = scmp.lt.u32.totalorder %s2248_s11, %s2302_s5 }
 0x2c2   : > { %p1707_p7 = scmp.lt.u32.totalorder %s1705_s10, %s1701_s6  ;;  %p1709_p11 = scmp.lt.u32.totalorder %s1701_s6, %s2248_s11 }
 0x2c3   : > { %p1703_p6 = pnand %p1702_p13, %p2316_p0 }
 0x2c4   : > { %p1708_p8 = por %p1707_p7, %p1706_p4 }
 0x2c5   : > { %p1704_p10 = pneg %p1703_p6 }
 0x2c6   : > { %p1710_p1 = por %p1709_p11, %p1708_p8 }
 0x2c8   : > { %p1711_p3 = pnand %p1710_p1, %p1704_p10 }
 0x2ca   : > { %1714 = shalt.err (!%p1711_p3)
}
 0x2cb   : > { %s1770_s13 = smov 256   ;;  %s1771_s8 = smov 16  }
 0x2cc   : > { %1495 = dma.vmem_to_hbm [thread:$0]  (%p2316_p0), %s2250_s29, 8192, %s2248_s11, %s1210_s22, %s1770_s13, %s1770_s13, %s1771_s8  }
 0x2cd PF: > { %s1239_s9 = sand.u32 1, %s1745_s18   ;;  %p2317_p5 = scmp.ne.s32.totalorder %s2307_s25, 0 }
 0x2ce   : > { %p2318_p9 = scmp.ge.s32.totalorder %s1757_s21, 2  ;;  %s1240_s14 = scalar_lea.sflag [#allocation4], %s1239_s9 }
 0x2d0   : > { %p1509_p12 = pnand %p2318_p9, %p2317_p5 }
 0x2d2   : > { %1740 = dma.done.wait (!%p1509_p12), %s1240_s14, 8192  }
 0x2d3   : > { %1742 = vsyncadd (!%p1509_p12), %s1240_s14, 4294959104  ;;  %p19_p2 = scmp.ge.s32.totalorder %s1912_s16, 4   ;;  %s2319_s18 = smov %s1749_s19 }
 0x2d4   : > { %s2320_s19 = smov %s1753_s20  ;;  %s2321_s20 = smov %s1921_s27 }
 0x2d5   : > { %s2322_s21 = smov %s1912_s16  ;;  %21 = sbr.rel (!%p19_p2) target bundleno = 6 (0x6), region = 93 }
 0x2dc   :  { %1245 = vsyncpa [#allocation3], 1 }
 0x2dd   :  { %1247 = vsyncpa [#allocation3 + $0x1], 1 }
 0x2de   :  { %1248 = vsyncpa [#allocation6], 1 }
 0x2df   :  { %1249 = vsyncpa [#allocation4], 1 }
 0x2e0   :  { %1251 = vsyncpa [#allocation4 + $0x1], 1 }

// kernel: tpu_custom_call.1
= control target key start
LH: loop header
LB: loop body
LE: loop exit
PB: predicated region body
PF: predicated region fallthrough
CT: control target
= control target key end

     0   :  { %10 = vsyncpa [#allocation3], 0  ;;  %s2297_s0 = inlined_call_operand.hbm [shape: f32[512,256], index: 0, kind: input, shape index: {}]   ;;  %s2298_s1 = inlined_call_operand.hbm [shape: bf16[256,128], index: 1, kind: input, shape index: {}]   ;;  %s2299_s2 = inlined_call_operand.vmem [shape: f32[1,128], index: 2, kind: input, shape index: {}]   ;;  %s2300_s3 = inlined_call_operand.hbm [shape: bf16[128,256], index: 3, kind: input, shape index: {}]   ;;  %s2301_s4 = inlined_call_operand.vmem [shape: f32[1,256], index: 4, kind: input, shape index: {}]   ;;  %s2302_s5 = inlined_call_operand.hbm [shape: f32[512,256], index: 5, kind: output, shape index: {}]  }
   0x1   :  { %12 = vsyncpa [#allocation3 + $0x1], 0 }
   0x2   :  { %13 = vsyncpa [#allocation6], 0 }
   0x3   :  { %14 = vsyncpa [#allocation4], 0 }
   0x4   :  { %16 = vsyncpa [#allocation4 + $0x1], 0  ;;  %s1802_s18 = smov 0   ;;  %s1804_s19 = smov 0  }
   0x5   :  { %s1806_s20 = smov 0   ;;  %s1808_s21 = smov 0  }
   0x6 LB: > { %s1823_s22 = sadd.s32 4294967295, %s1757_s21   ;;  %s1316_s23 = sadd.s32 4294967294, %s1757_s21   ;;  %s1757_s21 = sphi %s1808_s21, %s2322_s21   ;;  %s1753_s20 = sphi %s1806_s20, %s2321_s20   ;;  %s1749_s19 = sphi %s1804_s19, %s2320_s19   ;;  %s1745_s18 = sphi %s1802_s18, %s2319_s18  }
   0x7   : > { %p42_p0 = scmp.ne.s32.totalorder %s1749_s19, %s1745_s18  ;;  %p2303_p1 = scmp.eq.s32.totalorder %s1823_s22, 0 }
   0x8   : > { %p156_p3 = scmp.eq.s32.totalorder %s1316_s23, 1  ;;  %p1317_p5 = scmp.ge.s32.totalorder %s1757_s21, 1 }
   0x9   : > { %p1832_p4 = por %p2303_p1, %p42_p0  ;;  %p163_p7 = scmp.lt.s32.totalorder %s1757_s21, 3 }
   0xa   : > { %p1837_p6 = por %p156_p3, %p42_p0  ;;  %s1759_s27 = smov [#allocation5]  }
   0xb   : > { %s2306_s24 = scalar_select %p1832_p4, 1, 0 }
   0xc   : > { %s2307_s25 = scalar_select %p1837_p6, 1, 0 }
   0xd   : > { %p1842_p8 = pnand %p1317_p5, %p163_p7  ;;  %s175_s28 = sshll.u32 %s1759_s27, 4  ;;  %s1846_s28 = int_to_ptr.vmem [resolvable:$true] %s175_s28 }
   0xe   : > { %s1760_s30 = smov [#allocation7]   ;;  %s1601_s9 = scalar_lea.hbm %s2298_s1, 2048 }
   0xf   : > { %p1497_p9 = pneg %p1842_p8  ;;  %s191_s6 = sshll.u32 %s1760_s30, 4  ;;  %s1857_s6 = int_to_ptr.vmem [resolvable:$true] %s191_s6 }
  0x10   : > { %p1602_p12 = scmp.ne.s32.totalorder %s2298_s1, %s1601_s9  ;;  %p1608_p5 = scmp.lt.u32.totalorder %s1601_s9, %s2298_s1 }
  0x11   : > { %p1853_p11 = pnand %p1497_p9, %p2303_p1 }
  0x13   : > { %p1603_p13 = pneg %p1853_p11 }
  0x15   : > { %p1604_p0 = pnand %p1603_p13, %p1602_p12 }
  0x17   : > { %p1605_p3 = pneg %p1604_p0 }
  0x19   : > { %p1610_p7 = pnand %p1608_p5, %p1605_p3 }
  0x1b   : > { %1613 = shalt.err (!%p1610_p7)
}
  0x1c   : > { %s1614_s14 = scalar_lea.vmem %s1846_s28, 2048  ;;  %p1622_p2 = scmp.lt.s32.totalorder %s1846_s28, %s1846_s28 }
  0x1d   : > { %p1615_p9 = scmp.ne.s32.totalorder %s1846_s28, %s1614_s14  ;;  %p1623_p12 = scmp.lt.s32.totalorder %s1614_s14, %s1614_s14 }
  0x1f   : > { %p1617_p10 = pnand %p1615_p9, %p1603_p13  ;;  %p1624_p0 = por %p1623_p12, %p1622_p2 }
  0x21   : > { %p1618_p1 = pneg %p1617_p10 }
  0x23   : > { %p1625_p6 = pnand %p1624_p0, %p1618_p1 }
  0x25   : > { %1628 = shalt.err (!%p1625_p6)
}
  0x26   : > { %s1761_s15 = smov 64   ;;  %s1762_s16 = smov 4  }
  0x27   : > { %1500 = dma.hbm_to_vmem [thread:$0]  (!%p1853_p11), %s2298_s1, 2048, %s1846_s28, [#allocation6], %s1761_s15, %s1761_s15, %s1762_s16  }
  0x28   : > { %s1629_s7 = scalar_lea.hbm %s2300_s3, 2048 }
  0x29   : > { %p1630_p2 = scmp.ne.s32.totalorder %s2300_s3, %s1629_s7  ;;  %p1636_p10 = scmp.lt.u32.totalorder %s1629_s7, %s2300_s3 }
  0x2b   : > { %p1632_p1 = pnand %p1630_p2, %p1603_p13 }
  0x2d   : > { %p1633_p6 = pneg %p1632_p1 }
  0x2f   : > { %p1638_p3 = pnand %p1636_p10, %p1633_p6 }
  0x31   : > { %1641 = shalt.err (!%p1638_p3)
}
  0x32   : > { %s1642_s28 = scalar_lea.vmem %s1857_s6, 2048  ;;  %p1650_p12 = scmp.lt.s32.totalorder %s1857_s6, %s1857_s6 }
  0x33   : > { %p1643_p5 = scmp.ne.s32.totalorder %s1857_s6, %s1642_s28  ;;  %p1651_p0 = scmp.lt.s32.totalorder %s1642_s28, %s1642_s28 }
  0x35   : > { %p1645_p7 = pnand %p1643_p5, %p1603_p13  ;;  %p1652_p2 = por %p1651_p0, %p1650_p12 }
  0x37   : > { %p1646_p9 = pneg %p1645_p7 }
  0x39   : > { %p1653_p1 = pnand %p1652_p2, %p1646_p9 }
  0x3b   : > { %1656 = shalt.err (!%p1653_p1)
}
  0x3c   : > { %s1763_s12 = smov 128   ;;  %s1764_s13 = smov 8  }
  0x3d   : > { %1503 = dma.hbm_to_vmem [thread:$0]  (!%p1853_p11), %s2300_s3, 2048, %s1857_s6, [#allocation6], %s1763_s12, %s1763_s12, %s1764_s13  }
  0x3e   : > { %s1912_s16 = sadd.s32 1, %s1757_s21   ;;  %s29_s23 = sadd.s32 1, %s1753_s20 }
  0x3f   : > { %s26_s17 = ssub.s32 %s1757_s21, %s1912_s16  ;;  %p36_p6 = scmp.ne.s32.totalorder %s1753_s20, %s1749_s19 }
  0x40   : > { %p27_p13 = scmp.eq.s32.totalorder %s26_s17, 0  ;;  %p37_p10 = scmp.eq.s32.totalorder %s1757_s21, 0 }
  0x41   : > { %p2310_p5 = scmp.eq.s32.totalorder %s1823_s22, 1  ;;  %p1514_p9 = scmp.lt.s32.totalorder %s1757_s21, 2 }
  0x42   : > { %s1921_s27 = scalar_select %p27_p13, %s1753_s20, %s29_s23  }
  0x43   : > { %p38_p3 = por %p37_p10, %p36_p6  ;;  %p1925_p7 = por %p2310_p5, %p36_p6 }
  0x44   : > { %s208_s29 = sand.u32 1, %s1753_s20   ;;  %s1370_s6 = sshll.u32 %s1757_s21, 13 }
  0x45   : > { %s2311_s30 = scalar_select %p1925_p7, 1, 0 }
  0x46   : > { %s1321_s7 = sshll.u32 %s208_s29, 9  ;;  %s1935_s10 = scalar_lea.hbm %s2297_s0, %s1370_s6 }
  0x47   : > { %s212_s11 = scalar_lea.vmem [#allocation2], %s1321_s7  ;;  %p1939_p11 = pnand %p1514_p9, %p38_p3 }
  0x48   : > { %s220_s28 = sshll.u32 %s212_s11, 4  ;;  %s1943_s13 = scalar_lea.sflag [#allocation3], %s208_s29  ;;  %s1937_s28 = int_to_ptr.vmem [resolvable:$true] %s220_s28 }
  0x49   : > { %s1657_s14 = scalar_lea.hbm %s1935_s10, 8192  ;;  %p1659_p0 = pneg %p1939_p11 }
  0x4a   : > { %p1658_p12 = scmp.ne.s32.totalorder %s1935_s10, %s1657_s14  ;;  %s1662_s23 = scalar_lea.hbm %s2297_s0, 16384 }
  0x4b   : > { %p1663_p13 = scmp.lt.u32.totalorder %s1935_s10, %s2297_s0  ;;  %p1664_p6 = scmp.lt.u32.totalorder %s1662_s23, %s1657_s14 }
  0x4c   : > { %p1660_p2 = pnand %p1659_p0, %p1658_p12  ;;  %p1666_p3 = scmp.lt.u32.totalorder %s1657_s14, %s1935_s10 }
  0x4d   : > { %p1665_p10 = por %p1664_p6, %p1663_p13 }
  0x4e   : > { %p1661_p1 = pneg %p1660_p2 }
  0x4f   : > { %p1667_p5 = por %p1666_p3, %p1665_p10 }
  0x51   : > { %p1668_p9 = pnand %p1667_p5, %p1661_p1 }
  0x53   : > { %1671 = shalt.err (!%p1668_p9)
}
  0x54   : > { %s1672_s29 = scalar_lea.vmem %s1937_s28, 8192  ;;  %s1765_s8 = smov [#allocation2]  }
  0x55   : > { %p1673_p12 = scmp.ne.s32.totalorder %s1937_s28, %s1672_s29  ;;  %s1677_s9 = sshll.u32 %s1765_s8, 4  ;;  %s1678_s9 = int_to_ptr.vmem [resolvable:$false] %s1677_s9 }
  0x56   : > { %s1679_s11 = scalar_lea.vmem %s1678_s9, 16384  ;;  %p1680_p4 = scmp.lt.s32.totalorder %s1937_s28, %s1678_s9 }
  0x57   : > { %p1675_p2 = pnand %p1673_p12, %p1659_p0  ;;  %p1681_p13 = scmp.lt.s32.totalorder %s1679_s11, %s1672_s29 }
  0x59   : > { %p1676_p7 = pneg %p1675_p2  ;;  %p1682_p6 = por %p1681_p13, %p1680_p4 }
  0x5b   : > { %p1683_p10 = pnand %p1682_p6, %p1676_p7 }
  0x5d   : > { %1686 = shalt.err (!%p1683_p10)
}
  0x5e   : > { %s1766_s14 = smov 256   ;;  %s1767_s15 = smov 16  }
  0x5f   : > { %1507 = dma.hbm_to_vmem [thread:$0]  (!%p1939_p11), %s1935_s10, 8192, %s1937_s28, %s1943_s13, %s1766_s14, %s1766_s14, %s1767_s15  }
  0x60   : > { %232 = sbr.rel (%p1842_p8) target bundleno = 717 (0x2cd), region = 40  ;;  %s1974_s17 = sand.u32 (!%p1842_p8), 1, %s1749_s19  }
  0x61   : > { %s1326_s23 = sshll.u32 (!%p1842_p8), %s1974_s17, 9  ;;  %s235_s7 = scalar_lea.sflag (!%p1842_p8), [#allocation3], %s1974_s17 }
  0x62   : > { %s1980_s6 = scalar_lea.vmem (!%p1842_p8), [#allocation2], %s1326_s23  ;;  %p2313_p4 = scmp.ne.s32.totalorder (!%p1842_p8), %s2306_s24, 0 }
  0x67   : > { %1732 = dma.done.wait (%p2313_p4), %s235_s7, 8192  }
  0x68   : > { %1734 = vsyncadd (%p2313_p4), %s235_s7, 4294959104  ;;  %p2314_p7 = scmp.eq.s32.totalorder %s1823_s22, 0 }
  0x6a   : > { %1736 = dma.done.wait (%p2314_p7), [#allocation6], 4096   ;;  %p2315_p8 = pmov %p2314_p7 }
  0x6b   : > { %v1561_v0 = vld [vmem:[#allocation5 + $0x40] sm:$0xff]   ;;  %v1563_v2 = vld [vmem:[#allocation5 + $0x48] sm:$0xff]   ;;  %v1565_v4 = vld [vmem:[#allocation5 + $0x50] sm:$0xff]   ;;  %s2120_s12 = scalar_lea.vmem [#allocation8], %s1326_s23  ;;  %s1372_s13 = sshll.u32 %s1823_s22, 13 }
  0x6c   : > { %1738 = vsyncadd (%p2315_p8), [#allocation6], 4294963200  ;;  %v1562_v1 = vld [vmem:[#allocation5] sm:$0xff]   ;;  %1373 = vmatprep.subr.bf16.mxu0 %v1561_v0  ;;  %v1564_v3 = vld [vmem:[#allocation5 + $0x8] sm:$0xff]   ;;  %s1224_s29 = sshll.u32 %s2120_s12, 4  ;;  %s2248_s11 = scalar_lea.hbm %s2302_s5, %s1372_s13  ;;  %s2250_s29 = int_to_ptr.vmem [resolvable:$true] %s1224_s29 }
  0x6d   : > { %1374 = vmatpush3.bf16.msra.mxu0 %v1562_v1  ;;  %v1566_v5 = vld [vmem:[#allocation5 + $0x10] sm:$0xff]   ;;  %v1567_v6 = vld [vmem:[#allocation5 + $0x58] sm:$0xff]   ;;  %v1569_v8 = vld [vmem:[#allocation5 + $0x60] sm:$0xff]   ;;  %s1210_s22 = scalar_lea.sflag [#allocation4], %s1974_s17  ;;  %s1687_s14 = scalar_lea.vmem %s2250_s29, 8192 }
  0x6e   : > { %1375 = vmatprep.subr.bf16.mxu0 %v1563_v2  ;;  %v1568_v7 = vld [vmem:[#allocation5 + $0x18] sm:$0xff]   ;;  %v1570_v9 = vld [vmem:[#allocation5 + $0x20] sm:$0xff]   ;;  %v1571_v10 = vld [vmem:[#allocation5 + $0x68] sm:$0xff]   ;;  %p1688_p11 = scmp.ne.s32.totalorder %s2250_s29, %s1687_s14  ;;  %p2316_p0 = scmp.ne.s32.totalorder %s2311_s30, 0 }
  0x6f   : > { %v277_v11 = vld [vmem:[%s1980_s6 + $0x8] sm:$0xff]  ;;  %v279_v12 = vld [vmem:[%s1980_s6 + $0x18] sm:$0xff]  ;;  %v1573_v17 = vld [vmem:[#allocation5 + $0x70] sm:$0xff]   ;;  %s1769_s15 = smov [#allocation8]  }
  0x70   : > { %v341_v13 = vmax.f32 %v277_v11, 0.0  ;;  %v343_v14 = vmax.f32 %v279_v12, 0.0  ;;  %v1572_v15 = vld [vmem:[#allocation5 + $0x28] sm:$0xff]   ;;  %v1574_v18 = vld [vmem:[#allocation5 + $0x30] sm:$0xff]   ;;  %v276_v19 = vld [vmem:[%s1980_s6] sm:$0xff]  ;;  %p1689_p1 = pnand %p1688_p11, %p2316_p0  ;;  %s1691_s23 = sshll.u32 %s1769_s15, 4  ;;  %s1692_s23 = int_to_ptr.vmem [resolvable:$false] %s1691_s23 }
  0x71   : > { %1376 = vmatpush3.bf16.msra.mxu0 %v1564_v3  ;;  %v278_v20 = vld [vmem:[%s1980_s6 + $0x10] sm:$0xff]  ;;  %v1575_v21 = vld [vmem:[#allocation5 + $0x78] sm:$0xff]   ;;  %v281_v22 = vld [vmem:[%s1980_s6 + $0x28] sm:$0xff]  ;;  %v340_v24 = vmax.f32 %v276_v19, 0.0  ;;  %s1693_s7 = scalar_lea.vmem %s1692_s23, 16384  ;;  %p1694_p5 = scmp.lt.s32.totalorder %s2250_s29, %s1692_s23 }
  0x72   : > { %1377 = vmatprep.subr.bf16.mxu0 %v1565_v4  ;;  %v405_v16 = vpack.c.bf16 %v343_v14, %v341_v13  ;;  %v283_v23 = vld [vmem:[%s1980_s6 + $0x38] sm:$0xff]  ;;  %v342_v25 = vmax.f32 %v278_v20, 0.0  ;;  %v345_v27 = vmax.f32 %v281_v22, 0.0  ;;  %v280_v31 = vld [vmem:[%s1980_s6 + $0x20] sm:$0xff]  ;;  %v282_v32 = vld [vmem:[%s1980_s6 + $0x30] sm:$0xff]  ;;  %p1690_p3 = pneg %p1689_p1  ;;  %p1695_p9 = scmp.lt.s32.totalorder %s1693_s7, %s1687_s14 }
  0x73   : > { %v1576_v26 = vld [vmem:[#allocation5 + $0x38] sm:$0xff]   ;;  %v347_v28 = vmax.f32 %v283_v23, 0.0  ;;  %v285_v33 = vld [vmem:[%s1980_s6 + $0x48] sm:$0xff]  ;;  %v344_v35 = vmax.f32 %v280_v31, 0.0  ;;  %v346_v36 = vmax.f32 %v282_v32, 0.0  ;;  %v284_v39 = vld [vmem:[%s1980_s6 + $0x40] sm:$0xff] }
  0x74   : > { %603 = vmatprep.mubr.bf16.mxu0 %v405_v16  ;;  %v404_v29 = vpack.c.bf16 %v342_v25, %v340_v24  ;;  %v287_v34 = vld [vmem:[%s1980_s6 + $0x58] sm:$0xff]  ;;  %v349_v37 = vmax.f32 %v285_v33, 0.0  ;;  %v286_v41 = vld [vmem:[%s1980_s6 + $0x50] sm:$0xff]  ;;  %v1577_v42 = vld [vmem:[#allocation7 + $0x4] ss:$8 sps:$4 sm:$0xff]   ;;  %v348_v49 = vmax.f32 %v284_v39, 0.0  ;;  %p1696_p12 = por %p1695_p9, %p1694_p5 }
  0x75   : > { %1378 = vmatpush3.bf16.msra.mxu0 %v1566_v5  ;;  %v407_v30 = vpack.c.bf16 %v347_v28, %v345_v27  ;;  %v351_v38 = vmax.f32 %v287_v34, 0.0  ;;  %v406_v40 = vpack.c.bf16 %v346_v36, %v344_v35  ;;  %v1579_v43 = vld [vmem:[#allocation7] ss:$8 sps:$4 sm:$0xff]   ;;  %v291_v46 = vld [vmem:[%s1980_s6 + $0x78] sm:$0xff]  ;;  %888 = vmatprep.subr.bf16.mxu1 %v1577_v42  ;;  %v350_v50 = vmax.f32 %v286_v41, 0.0  ;;  %v290_v59 = vld [vmem:[%s1980_s6 + $0x70] sm:$0xff] }
  0x76   : > { %1379 = vmatprep.subr.bf16.mxu0 %v1567_v6  ;;  %v289_v45 = vld [vmem:[%s1980_s6 + $0x68] sm:$0xff]  ;;  %v1580_v47 = vld [vmem:[#allocation7 + $0x14] ss:$8 sps:$4 sm:$0xff]   ;;  %889 = vmatpush1.bf16.msra.mxu1 %v1579_v43  ;;  %v1582_v48 = vld [vmem:[#allocation7 + $0x10] ss:$8 sps:$4 sm:$0xff]   ;;  %v355_v53 = vmax.f32 %v291_v46, 0.0  ;;  %p1697_p2 = pnand %p1696_p12, %p1690_p3 }
  0x77   : > { %v409_v44 = vpack.c.bf16 %v351_v38, %v349_v37  ;;  %890 = vmatprep.subr.bf16.mxu1 %v1580_v47  ;;  %v1583_v51 = vld [vmem:[#allocation7 + $0x24] ss:$8 sps:$4 sm:$0xff]   ;;  %v353_v52 = vmax.f32 %v289_v45, 0.0  ;;  %v1585_v54 = vld [vmem:[#allocation7 + $0x20] ss:$8 sps:$4 sm:$0xff]   ;;  %v408_v55 = vpack.c.bf16 %v350_v50, %v348_v49  ;;  %v295_v61 = vld [vmem:[%s1980_s6 + $0x98] sm:$0xff] }
  0x78   : > { %v1586_v56 = vld [vmem:[#allocation7 + $0x34] ss:$8 sps:$4 sm:$0xff]   ;;  %v288_v58 = vld [vmem:[%s1980_s6 + $0x60] sm:$0xff]  ;;  %v293_v60 = vld [vmem:[%s1980_s6 + $0x88] sm:$0xff]  ;;  %v354_v0 = vmax.f32 %v290_v59, 0.0  ;;  %v359_v3 = vmax.f32 %v295_v61, 0.0 }
  0x79   : > { %1380 = vmatpush3.bf16.msra.mxu0 %v1568_v7  ;;  %v411_v57 = vpack.c.bf16 %v355_v53, %v353_v52  ;;  %v1588_v62 = vld [vmem:[#allocation7 + $0x30] ss:$8 sps:$4 sm:$0xff]   ;;  %v352_v63 = vmax.f32 %v288_v58, 0.0  ;;  %v1589_v1 = vld [vmem:[#allocation7 + $0x44] ss:$8 sps:$4 sm:$0xff]   ;;  %v357_v2 = vmax.f32 %v293_v60, 0.0 }
  0x7a   : > { %1381 = vmatprep.subr.bf16.mxu0 %v1569_v8  ;;  %891 = vmatpush1.bf16.msra.mxu1 %v1582_v48  ;;  %v1591_v4 = vld [vmem:[#allocation7 + $0x40] ss:$8 sps:$4 sm:$0xff]   ;;  %v294_v8 = vld [vmem:[%s1980_s6 + $0x90] sm:$0xff]  ;;  %v303_v20 = vld [vmem:[%s1980_s6 + $0xd8] sm:$0xff] }
  0x7b   : > { %892 = vmatprep.subr.bf16.mxu1 %v1583_v51  ;;  %v410_v5 = vpack.c.bf16 %v354_v0, %v352_v63  ;;  %v413_v6 = vpack.c.bf16 %v359_v3, %v357_v2  ;;  %v292_v7 = vld [vmem:[%s1980_s6 + $0x80] sm:$0xff]  ;;  %v358_v12 = vmax.f32 %v294_v8, 0.0  ;;  %v301_v19 = vld [vmem:[%s1980_s6 + $0xc8] sm:$0xff]  ;;  %v367_v24 = vmax.f32 %v303_v20, 0.0  ;;  %v302_v28 = vld [vmem:[%s1980_s6 + $0xd0] sm:$0xff] }
  0x7c   : > { %v356_v11 = vmax.f32 %v292_v7, 0.0  ;;  %v365_v23 = vmax.f32 %v301_v19, 0.0  ;;  %v300_v27 = vld [vmem:[%s1980_s6 + $0xc0] sm:$0xff]  ;;  %v366_v32 = vmax.f32 %v302_v28, 0.0  ;;  %v306_v38 = vld [vmem:[%s1980_s6 + $0xf0] sm:$0xff]  ;;  %v309_v39 = vld [vmem:[%s1980_s6 + $0x108] sm:$0xff] }
  0x7d   : > { %1382 = vmatpush3.bf16.msra.mxu0 %v1570_v9  ;;  %v297_v9 = vld [vmem:[%s1980_s6 + $0xa8] sm:$0xff]  ;;  %v364_v31 = vmax.f32 %v300_v27, 0.0  ;;  %v304_v37 = vld [vmem:[%s1980_s6 + $0xe0] sm:$0xff]  ;;  %v370_v42 = vmax.f32 %v306_v38, 0.0  ;;  %v373_v43 = vmax.f32 %v309_v39, 0.0  ;;  %v310_v48 = vld [vmem:[%s1980_s6 + $0x110] sm:$0xff] }
  0x7e   : > { %1383 = vmatprep.subr.bf16.mxu0 %v1571_v10  ;;  %893 = vmatpush1.bf16.msra.mxu1 %v1585_v54  ;;  %v299_v10 = vld [vmem:[%s1980_s6 + $0xb8] sm:$0xff]  ;;  %v361_v13 = vmax.f32 %v297_v9, 0.0  ;;  %v368_v41 = vmax.f32 %v304_v37, 0.0  ;;  %v308_v47 = vld [vmem:[%s1980_s6 + $0x100] sm:$0xff]  ;;  %v313_v49 = vld [vmem:[%s1980_s6 + $0x128] sm:$0xff]  ;;  %v374_v52 = vmax.f32 %v310_v48, 0.0 }
  0x7f   : > { %894 = vmatprep.subr.bf16.mxu1 %v1586_v56  ;;  %v363_v14 = vmax.f32 %v299_v10, 0.0  ;;  %v416_v35 = vpack.c.bf16 %v366_v32, %v364_v31  ;;  %v315_v50 = vld [vmem:[%s1980_s6 + $0x138] sm:$0xff]  ;;  %v372_v51 = vmax.f32 %v308_v47, 0.0  ;;  %v377_v53 = vmax.f32 %v313_v49, 0.0  ;;  %v314_v58 = vld [vmem:[%s1980_s6 + $0x130] sm:$0xff]  ;;  %v317_v59 = vld [vmem:[%s1980_s6 + $0x148] sm:$0xff] }
  0x80   : > { %v418_v45 = vpack.c.bf16 %v370_v42, %v368_v41  ;;  %v379_v54 = vmax.f32 %v315_v50, 0.0  ;;  %v319_v60 = vld [vmem:[%s1980_s6 + $0x158] sm:$0xff]  ;;  %v381_v63 = vmax.f32 %v317_v59, 0.0  ;;  %v316_v3 = vld [vmem:[%s1980_s6 + $0x140] sm:$0xff]  ;;  %v329_v28 = vld [vmem:[%s1980_s6 + $0x1a8] sm:$0xff] }
  0x81   : > { %1384 = vmatpush3.bf16.msra.mxu0 %v1572_v15  ;;  %v412_v15 = vpack.c.bf16 %v358_v12, %v356_v11  ;;  %v415_v16 = vpack.c.bf16 %v363_v14, %v361_v13  ;;  %v383_v0 = vmax.f32 %v319_v60, 0.0  ;;  %v380_v7 = vmax.f32 %v316_v3, 0.0  ;;  %v320_v13 = vld [vmem:[%s1980_s6 + $0x160] sm:$0xff]  ;;  %v322_v14 = vld [vmem:[%s1980_s6 + $0x170] sm:$0xff]  ;;  %v333_v41 = vld [vmem:[%s1980_s6 + $0x1c8] sm:$0xff] }
  0x82   : > { %1385 = vmatprep.subr.bf16.mxu0 %v1573_v17  ;;  %895 = vmatpush1.bf16.msra.mxu1 %v1588_v62  ;;  %v296_v17 = vld [vmem:[%s1980_s6 + $0xa0] sm:$0xff]  ;;  %v423_v56 = vpack.c.bf16 %v379_v54, %v377_v53  ;;  %v378_v62 = vmax.f32 %v314_v58, 0.0  ;;  %v335_v42 = vld [vmem:[%s1980_s6 + $0x1d8] sm:$0xff] }
  0x83   : > { %896 = vmatprep.subr.bf16.mxu1 %v1589_v1  ;;  %v425_v2 = vpack.c.bf16 %v383_v0, %v381_v63  ;;  %v1595_v27 = vld [vmem:[#allocation7 + $0x64] ss:$8 sps:$4 sm:$0xff]   ;;  %v399_v47 = vmax.f32 %v335_v42, 0.0  ;;  %v339_v53 = vld [vmem:[%s1980_s6 + $0x1f8] sm:$0xff] }
  0x84   : > { %v328_v39 = vld [vmem:[%s1980_s6 + $0x1a0] sm:$0xff] }
  0x85   : > { %1386 = vmatpush3.bf16.msra.mxu0 %v1574_v18  ;;  %v298_v18 = vld [vmem:[%s1980_s6 + $0xb0] sm:$0xff]  ;;  %v332_v50 = vld [vmem:[%s1980_s6 + $0x1c0] sm:$0xff] }
  0x86   : > { %1387 = vmatprep.subr.bf16.mxu0 %v1575_v21  ;;  %897 = vmatpush1.bf16.msra.mxu1 %v1591_v4  ;;  %v360_v21 = vmax.f32 %v296_v17, 0.0  ;;  %v362_v22 = vmax.f32 %v298_v18, 0.0  ;;  %v318_v4 = vld [vmem:[%s1980_s6 + $0x150] sm:$0xff]  ;;  %v384_v17 = vmax.f32 %v320_v13, 0.0  ;;  %v386_v18 = vmax.f32 %v322_v14, 0.0  ;;  %v336_v60 = vld [vmem:[%s1980_s6 + $0x1e0] sm:$0xff] }
  0x87   : > { %v382_v8 = vmax.f32 %v318_v4, 0.0  ;;  %v396_v54 = vmax.f32 %v332_v50, 0.0 }
  0x88   : > { %v414_v25 = vpack.c.bf16 %v362_v22, %v360_v21  ;;  %v1592_v21 = vld [vmem:[#allocation7 + $0x54] ss:$8 sps:$4 sm:$0xff]   ;;  %v1594_v22 = vld [vmem:[#allocation7 + $0x50] ss:$8 sps:$4 sm:$0xff]  }
  0x89   : > { %1388 = vmatpush3.bf16.msra.mxu0 %v1576_v26  ;;  %v417_v26 = vpack.c.bf16 %v367_v24, %v365_v23  ;;  %v424_v11 = vpack.c.bf16 %v382_v8, %v380_v7  ;;  %898 = vmatprep.subr.bf16.mxu1 %v1592_v21  ;;  %v426_v23 = vpack.c.bf16 %v386_v18, %v384_v17 }
  0x8a   : > { %899 = vmatpush1.bf16.msra.mxu1 %v1594_v22 }
  0x8b   : > { %900 = vmatprep.subr.bf16.mxu1 %v1595_v27 }
  0x8c   : > { %604 = vmatmul.mubr.bf16.vlgmr.msra.gmra.mrb[0].mxu0 %v404_v29  ;;  %v305_v29 = vld [vmem:[%s1980_s6 + $0xe8] sm:$0xff] }
  0x8d   : > { %611 = vmatprep.mubr.bf16.mxu0 %v407_v30  ;;  %v307_v30 = vld [vmem:[%s1980_s6 + $0xf8] sm:$0xff]  ;;  %v369_v33 = vmax.f32 %v305_v29, 0.0 }
  0x8e   : > { %v371_v34 = vmax.f32 %v307_v30, 0.0  ;;  %v331_v29 = vld [vmem:[%s1980_s6 + $0x1b8] sm:$0xff]  ;;  %v1597_v30 = vld [vmem:[#allocation7 + $0x60] ss:$8 sps:$4 sm:$0xff]  }
  0x8f   : > { %901 = vmatpush1.bf16.msra.mxu1 %v1597_v30 }
  0x90   : > { %v419_v36 = vpack.c.bf16 %v371_v34, %v369_v33  ;;  %v393_v33 = vmax.f32 %v329_v28, 0.0  ;;  %v395_v34 = vmax.f32 %v331_v29, 0.0 }
  0x92   : > { %v431_v38 = vpack.c.bf16 %v395_v34, %v393_v33 }
  0x94   : > { %612 = vmatmul.mubr.bf16.gmra.mrb[4].mxu0 %v406_v40  ;;  %v311_v40 = vld [vmem:[%s1980_s6 + $0x118] sm:$0xff] }
  0x95   : > { %619 = vmatprep.mubr.bf16.mxu0 %v409_v44  ;;  %v375_v44 = vmax.f32 %v311_v40, 0.0  ;;  %v330_v40 = vld [vmem:[%s1980_s6 + $0x1b0] sm:$0xff] }
  0x97   : > { %v421_v46 = vpack.c.bf16 %v375_v44, %v373_v43  ;;  %v1768_v43 = vmov 0   ;;  %v392_v44 = vmax.f32 %v328_v39, 0.0 }
  0x98   : > { %920 = vmatprep.mubr.bf16.mxu1 %v1768_v43 }
  0x9c   : > { %620 = vmatmul.mubr.bf16.gmra.mrb[8].mxu0 %v408_v55  ;;  %v420_v55 = vpack.c.bf16 %v374_v52, %v372_v51  ;;  %v334_v51 = vld [vmem:[%s1980_s6 + $0x1d0] sm:$0xff]  ;;  %v337_v52 = vld [vmem:[%s1980_s6 + $0x1e8] sm:$0xff] }
  0x9d   : > { %627 = vmatprep.mubr.bf16.mxu0 %v411_v57  ;;  %v312_v57 = vld [vmem:[%s1980_s6 + $0x120] sm:$0xff] }
  0x9e   : > { %v376_v61 = vmax.f32 %v312_v57, 0.0  ;;  %v403_v57 = vmax.f32 %v339_v53, 0.0 }
  0xa0   : > { %v422_v1 = vpack.c.bf16 %v378_v62, %v376_v61  ;;  %v338_v61 = vld [vmem:[%s1980_s6 + $0x1f0] sm:$0xff]  ;;  %v400_v62 = vmax.f32 %v336_v60, 0.0 }
  0xa1   : > { %v402_v63 = vmax.f32 %v338_v61, 0.0 }
  0xa3   : > { %v434_v0 = vpack.c.bf16 %v402_v63, %v400_v62 }
  0xa4   : > { %628 = vmatmul.mubr.bf16.gmra.mrb[12].mxu0 %v410_v5  ;;  %v321_v5 = vld [vmem:[%s1980_s6 + $0x168] sm:$0xff] }
  0xa5   : > { %635 = vmatprep.mubr.bf16.mxu0 %v413_v6  ;;  %v323_v6 = vld [vmem:[%s1980_s6 + $0x178] sm:$0xff]  ;;  %v385_v9 = vmax.f32 %v321_v5, 0.0 }
  0xa6   : > { %v387_v10 = vmax.f32 %v323_v6, 0.0 }
  0xa8   : > { %v427_v12 = vpack.c.bf16 %v387_v10, %v385_v9 }
  0xac   : > { %636 = vmatmul.mubr.bf16.gmra.mrb[16].mxu0 %v412_v15  ;;  %v325_v15 = vld [vmem:[%s1980_s6 + $0x188] sm:$0xff] }
  0xad   : > { %643 = vmatprep.mubr.bf16.mxu0 %v415_v16  ;;  %v327_v16 = vld [vmem:[%s1980_s6 + $0x198] sm:$0xff]  ;;  %v389_v19 = vmax.f32 %v325_v15, 0.0 }
  0xae   : > { %v391_v20 = vmax.f32 %v327_v16, 0.0 }
  0xb0   : > { %v429_v24 = vpack.c.bf16 %v391_v20, %v389_v19 }
  0xb4   : > { %644 = vmatmul.mubr.bf16.gmra.mrb[20].mxu0 %v414_v25  ;;  %v324_v25 = vld [vmem:[%s1980_s6 + $0x180] sm:$0xff] }
  0xb5   : > { %651 = vmatprep.mubr.bf16.mxu0 %v417_v26  ;;  %v326_v26 = vld [vmem:[%s1980_s6 + $0x190] sm:$0xff]  ;;  %v388_v31 = vmax.f32 %v324_v25, 0.0 }
  0xb6   : > { %v390_v32 = vmax.f32 %v326_v26, 0.0 }
  0xb8   : > { %v428_v37 = vpack.c.bf16 %v390_v32, %v388_v31 }
  0xbc   : > { %652 = vmatmul.mubr.bf16.gmra.mrb[24].mxu0 %v416_v35  ;;  %v1598_v35 = vld [vmem:[#allocation7 + $0x74] ss:$8 sps:$4 sm:$0xff]  }
  0xbd   : > { %659 = vmatprep.mubr.bf16.mxu0 %v419_v36  ;;  %v1600_v36 = vld [vmem:[#allocation7 + $0x70] ss:$8 sps:$4 sm:$0xff]   ;;  %902 = vmatprep.subr.bf16.mxu1 %v1598_v35 }
  0xbe   : > { %903 = vmatpush1.bf16.msra.mxu1 %v1600_v36 }
  0xc4   : > { %660 = vmatmul.mubr.bf16.gmra.mrb[28].mxu0 %v418_v45  ;;  %v394_v45 = vmax.f32 %v330_v40, 0.0 }
  0xc5   : > { %667 = vmatprep.mubr.bf16.mxu0 %v421_v46  ;;  %v397_v46 = vmax.f32 %v333_v41, 0.0 }
  0xc6   : > { %v430_v48 = vpack.c.bf16 %v394_v45, %v392_v44 }
  0xc7   : > { %v433_v49 = vpack.c.bf16 %v399_v47, %v397_v46 }
  0xcc   : > { %668 = vmatmul.mubr.bf16.gmra.mrb[32].mxu0 %v420_v55  ;;  %v398_v55 = vmax.f32 %v334_v51, 0.0 }
  0xcd   : > { %675 = vmatprep.mubr.bf16.mxu0 %v423_v56  ;;  %v401_v56 = vmax.f32 %v337_v52, 0.0 }
  0xce   : > { %v432_v58 = vpack.c.bf16 %v398_v55, %v396_v54 }
  0xcf   : > { %v435_v59 = vpack.c.bf16 %v403_v57, %v401_v56 }
  0xd4   : > { %676 = vmatmul.mubr.bf16.gmra.mrb[36].mxu0 %v422_v1 }
  0xd5   : > { %683 = vmatprep.mubr.bf16.mxu0 %v425_v2  ;;  %v2058_v2 = vld [vmem:[%s2299_s2] ss:$0 sm:$0xff] }
  0xdc   : > { %684 = vmatmul.mubr.bf16.gmra.mrb[40].mxu0 %v424_v11 }
  0xdd   : > { %691 = vmatprep.mubr.bf16.mxu0 %v427_v12 }
  0xe4   : > { %692 = vmatmul.mubr.bf16.gmra.mrb[44].mxu0 %v426_v23 }
  0xe5   : > { %699 = vmatprep.mubr.bf16.mxu0 %v429_v24 }
  0xec   : > { %700 = vmatmul.mubr.bf16.gmra.mrb[48].mxu0 %v428_v37 }
  0xed   : > { %707 = vmatprep.mubr.bf16.mxu0 %v431_v38 }
  0xf4   : > { %708 = vmatmul.mubr.bf16.gmra.mrb[52].mxu0 %v430_v48 }
  0xf5   : > { %715 = vmatprep.mubr.bf16.mxu0 %v433_v49 }
  0xfc   : > { %716 = vmatmul.mubr.bf16.gmra.mrb[56].mxu0 %v432_v58 }
  0xfd   : > { %723 = vmatprep.mubr.bf16.mxu0 %v435_v59 }
 0x104   : > { %724 = vmatmul.mubr.bf16.gmra.mrb[60].mxu0 %v434_v0 }
 0x15f   : > { %v1389_v1 = vpop.f32.mrb[0].mxu0 }
 0x160   : > { %v1390_v3 = vpop.f32.mrb[1].mxu0 }
 0x161   : > { %v1391_v4 = vadd.f32 %v1390_v3, %v1389_v1  ;;  %v1392_v5 = vpop.f32.mrb[2].mxu0 }
 0x162   : > { %v1393_v6 = vpop.f32.mrb[3].mxu0 }
 0x163   : > { %v606_v7 = vadd.f32 %v1391_v4, %v2058_v2  ;;  %v1394_v8 = vadd.f32 %v1393_v6, %v1392_v5 }
 0x165   : > { %v609_v9 = vadd.f32 %v1394_v8, %v2058_v2  ;;  %v732_v10 = vmax.f32 %v606_v7, 0.0 }
 0x167   : > { %v733_v11 = vmax.f32 %v609_v9, 0.0  ;;  %v1395_v12 = vpop.f32.mrb[4].mxu0 }
 0x168   : > { %v1396_v13 = vpop.f32.mrb[5].mxu0 }
 0x169   : > { %v1397_v14 = vadd.f32 %v1396_v13, %v1395_v12  ;;  %v1398_v15 = vpop.f32.mrb[6].mxu0  ;;  %v764_v16 = vpack.c.bf16 %v733_v11, %v732_v10 }
 0x16a   : > { %v1399_v17 = vpop.f32.mrb[7].mxu0 }
 0x16b   : > { %v614_v18 = vadd.f32 %v1397_v14, %v2058_v2  ;;  %v1400_v19 = vadd.f32 %v1399_v17, %v1398_v15  ;;  %921 = vmatmul.mubr.bf16.vlgmr.msra.gmra.mrb[0].mxu1 %v764_v16 }
 0x16c   : > { %930 = vmatprep.mubr.bf16.mxu1 %v1768_v43 }
 0x16d   : > { %v617_v20 = vadd.f32 %v1400_v19, %v2058_v2  ;;  %v734_v21 = vmax.f32 %v614_v18, 0.0 }
 0x16f   : > { %v735_v22 = vmax.f32 %v617_v20, 0.0  ;;  %v1401_v23 = vpop.f32.mrb[8].mxu0 }
 0x170   : > { %v1402_v24 = vpop.f32.mrb[9].mxu0 }
 0x171   : > { %v1403_v25 = vadd.f32 %v1402_v24, %v1401_v23  ;;  %v1404_v26 = vpop.f32.mrb[10].mxu0  ;;  %v765_v27 = vpack.c.bf16 %v735_v22, %v734_v21 }
 0x172   : > { %v1405_v28 = vpop.f32.mrb[11].mxu0 }
 0x173   : > { %v622_v29 = vadd.f32 %v1403_v25, %v2058_v2  ;;  %v1406_v30 = vadd.f32 %v1405_v28, %v1404_v26  ;;  %931 = vmatmul.mubr.bf16.gmra.mrb[4].mxu1 %v765_v27 }
 0x174   : > { %940 = vmatprep.mubr.bf16.mxu1 %v1768_v43 }
 0x175   : > { %v625_v31 = vadd.f32 %v1406_v30, %v2058_v2  ;;  %v736_v32 = vmax.f32 %v622_v29, 0.0 }
 0x177   : > { %v737_v33 = vmax.f32 %v625_v31, 0.0  ;;  %v1407_v34 = vpop.f32.mrb[12].mxu0 }
 0x178   : > { %v1408_v35 = vpop.f32.mrb[13].mxu0 }
 0x179   : > { %v1409_v36 = vadd.f32 %v1408_v35, %v1407_v34  ;;  %v1410_v37 = vpop.f32.mrb[14].mxu0  ;;  %v766_v38 = vpack.c.bf16 %v737_v33, %v736_v32 }
 0x17a   : > { %v1411_v39 = vpop.f32.mrb[15].mxu0 }
 0x17b   : > { %v630_v40 = vadd.f32 %v1409_v36, %v2058_v2  ;;  %v1412_v41 = vadd.f32 %v1411_v39, %v1410_v37  ;;  %941 = vmatmul.mubr.bf16.gmra.mrb[8].mxu1 %v766_v38 }
 0x17c   : > { %950 = vmatprep.mubr.bf16.mxu1 %v1768_v43 }
 0x17d   : > { %v633_v42 = vadd.f32 %v1412_v41, %v2058_v2  ;;  %v738_v44 = vmax.f32 %v630_v40, 0.0 }
 0x17f   : > { %v739_v45 = vmax.f32 %v633_v42, 0.0  ;;  %v1413_v46 = vpop.f32.mrb[16].mxu0 }
 0x180   : > { %v1414_v47 = vpop.f32.mrb[17].mxu0 }
 0x181   : > { %v1415_v48 = vadd.f32 %v1414_v47, %v1413_v46  ;;  %v1416_v49 = vpop.f32.mrb[18].mxu0  ;;  %v767_v50 = vpack.c.bf16 %v739_v45, %v738_v44 }
 0x182   : > { %v1417_v51 = vpop.f32.mrb[19].mxu0 }
 0x183   : > { %v638_v52 = vadd.f32 %v1415_v48, %v2058_v2  ;;  %v1418_v53 = vadd.f32 %v1417_v51, %v1416_v49  ;;  %951 = vmatmul.mubr.bf16.gmra.mrb[12].mxu1 %v767_v50 }
 0x184   : > { %960 = vmatprep.mubr.bf16.mxu1 %v1768_v43 }
 0x185   : > { %v641_v54 = vadd.f32 %v1418_v53, %v2058_v2  ;;  %v740_v55 = vmax.f32 %v638_v52, 0.0 }
 0x187   : > { %v741_v56 = vmax.f32 %v641_v54, 0.0  ;;  %v1419_v57 = vpop.f32.mrb[20].mxu0 }
 0x188   : > { %v1420_v58 = vpop.f32.mrb[21].mxu0 }
 0x189   : > { %v1421_v59 = vadd.f32 %v1420_v58, %v1419_v57  ;;  %v1422_v60 = vpop.f32.mrb[22].mxu0  ;;  %v768_v61 = vpack.c.bf16 %v741_v56, %v740_v55 }
 0x18a   : > { %v1423_v62 = vpop.f32.mrb[23].mxu0 }
 0x18b   : > { %v646_v63 = vadd.f32 %v1421_v59, %v2058_v2  ;;  %v1424_v0 = vadd.f32 %v1423_v62, %v1422_v60  ;;  %961 = vmatmul.mubr.bf16.gmra.mrb[16].mxu1 %v768_v61 }
 0x18c   : > { %970 = vmatprep.mubr.bf16.mxu1 %v1768_v43 }
 0x18d   : > { %v649_v1 = vadd.f32 %v1424_v0, %v2058_v2  ;;  %v742_v3 = vmax.f32 %v646_v63, 0.0 }
 0x18f   : > { %v743_v4 = vmax.f32 %v649_v1, 0.0  ;;  %v1425_v5 = vpop.f32.mrb[24].mxu0 }
 0x190   : > { %v1426_v6 = vpop.f32.mrb[25].mxu0 }
 0x191   : > { %v1427_v7 = vadd.f32 %v1426_v6, %v1425_v5  ;;  %v1428_v8 = vpop.f32.mrb[26].mxu0  ;;  %v769_v9 = vpack.c.bf16 %v743_v4, %v742_v3 }
 0x192   : > { %v1429_v10 = vpop.f32.mrb[27].mxu0 }
 0x193   : > { %v654_v11 = vadd.f32 %v1427_v7, %v2058_v2  ;;  %v1430_v12 = vadd.f32 %v1429_v10, %v1428_v8  ;;  %971 = vmatmul.mubr.bf16.gmra.mrb[20].mxu1 %v769_v9 }
 0x194   : > { %980 = vmatprep.mubr.bf16.mxu1 %v1768_v43 }
 0x195   : > { %v657_v13 = vadd.f32 %v1430_v12, %v2058_v2  ;;  %v744_v14 = vmax.f32 %v654_v11, 0.0 }
 0x197   : > { %v745_v15 = vmax.f32 %v657_v13, 0.0  ;;  %v1431_v16 = vpop.f32.mrb[28].mxu0 }
 0x198   : > { %v1432_v17 = vpop.f32.mrb[29].mxu0 }
 0x199   : > { %v1433_v18 = vadd.f32 %v1432_v17, %v1431_v16  ;;  %v1434_v19 = vpop.f32.mrb[30].mxu0  ;;  %v770_v20 = vpack.c.bf16 %v745_v15, %v744_v14 }
 0x19a   : > { %v1435_v21 = vpop.f32.mrb[31].mxu0 }
 0x19b   : > { %v662_v22 = vadd.f32 %v1433_v18, %v2058_v2  ;;  %v1436_v23 = vadd.f32 %v1435_v21, %v1434_v19  ;;  %981 = vmatmul.mubr.bf16.gmra.mrb[24].mxu1 %v770_v20 }
 0x19c   : > { %990 = vmatprep.mubr.bf16.mxu1 %v1768_v43 }
 0x19d   : > { %v665_v24 = vadd.f32 %v1436_v23, %v2058_v2  ;;  %v746_v25 = vmax.f32 %v662_v22, 0.0 }
 0x19f   : > { %v747_v26 = vmax.f32 %v665_v24, 0.0  ;;  %v1437_v27 = vpop.f32.mrb[32].mxu0 }
 0x1a0   : > { %v1438_v28 = vpop.f32.mrb[33].mxu0 }
 0x1a1   : > { %v1439_v29 = vadd.f32 %v1438_v28, %v1437_v27  ;;  %v1440_v30 = vpop.f32.mrb[34].mxu0  ;;  %v771_v31 = vpack.c.bf16 %v747_v26, %v746_v25 }
 0x1a2   : > { %v1441_v32 = vpop.f32.mrb[35].mxu0 }
 0x1a3   : > { %v670_v33 = vadd.f32 %v1439_v29, %v2058_v2  ;;  %v1442_v34 = vadd.f32 %v1441_v32, %v1440_v30  ;;  %991 = vmatmul.mubr.bf16.gmra.mrb[28].mxu1 %v771_v31 }
 0x1a4   : > { %1000 = vmatprep.mubr.bf16.mxu1 %v1768_v43 }
 0x1a5   : > { %v673_v35 = vadd.f32 %v1442_v34, %v2058_v2  ;;  %v748_v36 = vmax.f32 %v670_v33, 0.0 }
 0x1a7   : > { %v749_v37 = vmax.f32 %v673_v35, 0.0  ;;  %v1443_v38 = vpop.f32.mrb[36].mxu0 }
 0x1a8   : > { %v1444_v39 = vpop.f32.mrb[37].mxu0 }
 0x1a9   : > { %v1445_v40 = vadd.f32 %v1444_v39, %v1443_v38  ;;  %v1446_v41 = vpop.f32.mrb[38].mxu0  ;;  %v772_v42 = vpack.c.bf16 %v749_v37, %v748_v36 }
 0x1aa   : > { %v1447_v44 = vpop.f32.mrb[39].mxu0 }
 0x1ab   : > { %v678_v45 = vadd.f32 %v1445_v40, %v2058_v2  ;;  %v1448_v46 = vadd.f32 %v1447_v44, %v1446_v41  ;;  %1001 = vmatmul.mubr.bf16.gmra.mrb[32].mxu1 %v772_v42 }
 0x1ac   : > { %1010 = vmatprep.mubr.bf16.mxu1 %v1768_v43 }
 0x1ad   : > { %v681_v47 = vadd.f32 %v1448_v46, %v2058_v2  ;;  %v750_v48 = vmax.f32 %v678_v45, 0.0 }
 0x1af   : > { %v751_v49 = vmax.f32 %v681_v47, 0.0  ;;  %v1449_v50 = vpop.f32.mrb[40].mxu0 }
 0x1b0   : > { %v1450_v51 = vpop.f32.mrb[41].mxu0 }
 0x1b1   : > { %v1451_v52 = vadd.f32 %v1450_v51, %v1449_v50  ;;  %v1452_v53 = vpop.f32.mrb[42].mxu0  ;;  %v773_v54 = vpack.c.bf16 %v751_v49, %v750_v48 }
 0x1b2   : > { %v1453_v55 = vpop.f32.mrb[43].mxu0 }
 0x1b3   : > { %v686_v56 = vadd.f32 %v1451_v52, %v2058_v2  ;;  %v1454_v57 = vadd.f32 %v1453_v55, %v1452_v53  ;;  %1011 = vmatmul.mubr.bf16.gmra.mrb[36].mxu1 %v773_v54  ;;  %v798_v55 = vlaneseq }
 0x1b4   : > { %1020 = vmatprep.mubr.bf16.mxu1 %v1768_v43 }
 0x1b5   : > { %v689_v58 = vadd.f32 %v1454_v57, %v2058_v2  ;;  %v752_v59 = vmax.f32 %v686_v56, 0.0  ;;  %v799_v56 = vshrl.u32 %v798_v55, 7 }
 0x1b7   : > { %v753_v60 = vmax.f32 %v689_v58, 0.0  ;;  %v1455_v61 = vpop.f32.mrb[44].mxu0  ;;  %v800_v57 = vsub.s32 0, %v799_v56  ;;  %v796_v58 = vld [vmem:[%s2301_s4] sm:$0x3] }
 0x1b8   : > { %v1456_v62 = vpop.f32.mrb[45].mxu0 }
 0x1b9   : > { %v1457_v63 = vadd.f32 %v1456_v62, %v1455_v61  ;;  %v1458_v0 = vpop.f32.mrb[46].mxu0  ;;  %v774_v1 = vpack.c.bf16 %v753_v60, %v752_v59  ;;  %v804_v59 = vsub.s32 1, %v799_v56  ;;  %v2110_v60 = vrot.slane %v796_v58, %v800_v57 }
 0x1ba   : > { %v1459_v3 = vpop.f32.mrb[47].mxu0 }
 0x1bb   : > { %v694_v4 = vadd.f32 %v1457_v63, %v2058_v2  ;;  %v1460_v5 = vadd.f32 %v1459_v3, %v1458_v0  ;;  %1021 = vmatmul.mubr.bf16.gmra.mrb[40].mxu1 %v774_v1  ;;  %v2112_v61 = vrot.slane %v796_v58, %v804_v59 }
 0x1bc   : > { %1030 = vmatprep.mubr.bf16.mxu1 %v1768_v43 }
 0x1bd   : > { %v697_v6 = vadd.f32 %v1460_v5, %v2058_v2  ;;  %v754_v7 = vmax.f32 %v694_v4, 0.0 }
 0x1bf   : > { %v755_v8 = vmax.f32 %v697_v6, 0.0  ;;  %v1461_v9 = vpop.f32.mrb[48].mxu0 }
 0x1c0   : > { %v1462_v10 = vpop.f32.mrb[49].mxu0 }
 0x1c1   : > { %v1463_v11 = vadd.f32 %v1462_v10, %v1461_v9  ;;  %v1464_v12 = vpop.f32.mrb[50].mxu0  ;;  %v775_v13 = vpack.c.bf16 %v755_v8, %v754_v7 }
 0x1c2   : > { %v1465_v14 = vpop.f32.mrb[51].mxu0 }
 0x1c3   : > { %v702_v15 = vadd.f32 %v1463_v11, %v2058_v2  ;;  %v1466_v16 = vadd.f32 %v1465_v14, %v1464_v12  ;;  %1031 = vmatmul.mubr.bf16.gmra.mrb[44].mxu1 %v775_v13 }
 0x1c4   : > { %1040 = vmatprep.mubr.bf16.mxu1 %v1768_v43 }
 0x1c5   : > { %v705_v17 = vadd.f32 %v1466_v16, %v2058_v2  ;;  %v756_v18 = vmax.f32 %v702_v15, 0.0 }
 0x1c7   : > { %v757_v19 = vmax.f32 %v705_v17, 0.0  ;;  %v1467_v20 = vpop.f32.mrb[52].mxu0 }
 0x1c8   : > { %v1468_v21 = vpop.f32.mrb[53].mxu0 }
 0x1c9   : > { %v1469_v22 = vadd.f32 %v1468_v21, %v1467_v20  ;;  %v1470_v23 = vpop.f32.mrb[54].mxu0  ;;  %v776_v24 = vpack.c.bf16 %v757_v19, %v756_v18 }
 0x1ca   : > { %v1471_v25 = vpop.f32.mrb[55].mxu0 }
 0x1cb   : > { %v710_v26 = vadd.f32 %v1469_v22, %v2058_v2  ;;  %v1472_v27 = vadd.f32 %v1471_v25, %v1470_v23  ;;  %1041 = vmatmul.mubr.bf16.gmra.mrb[48].mxu1 %v776_v24 }
 0x1cc   : > { %1050 = vmatprep.mubr.bf16.mxu1 %v1768_v43 }
 0x1cd   : > { %v713_v28 = vadd.f32 %v1472_v27, %v2058_v2  ;;  %v758_v29 = vmax.f32 %v710_v26, 0.0 }
 0x1cf   : > { %v759_v30 = vmax.f32 %v713_v28, 0.0  ;;  %v1473_v31 = vpop.f32.mrb[56].mxu0 }
 0x1d0   : > { %v1474_v32 = vpop.f32.mrb[57].mxu0 }
 0x1d1   : > { %v1475_v33 = vadd.f32 %v1474_v32, %v1473_v31  ;;  %v1476_v34 = vpop.f32.mrb[58].mxu0  ;;  %v777_v35 = vpack.c.bf16 %v759_v30, %v758_v29 }
 0x1d2   : > { %v1477_v36 = vpop.f32.mrb[59].mxu0 }
 0x1d3   : > { %v718_v37 = vadd.f32 %v1475_v33, %v2058_v2  ;;  %v1478_v38 = vadd.f32 %v1477_v36, %v1476_v34  ;;  %1051 = vmatmul.mubr.bf16.gmra.mrb[52].mxu1 %v777_v35 }
 0x1d4   : > { %1060 = vmatprep.mubr.bf16.mxu1 %v1768_v43 }
 0x1d5   : > { %v721_v39 = vadd.f32 %v1478_v38, %v2058_v2  ;;  %v760_v40 = vmax.f32 %v718_v37, 0.0 }
 0x1d7   : > { %v761_v41 = vmax.f32 %v721_v39, 0.0  ;;  %v1479_v42 = vpop.f32.mrb[60].mxu0 }
 0x1d8   : > { %v1480_v44 = vpop.f32.mrb[61].mxu0 }
 0x1d9   : > { %v1481_v45 = vadd.f32 %v1480_v44, %v1479_v42  ;;  %v1482_v46 = vpop.f32.mrb[62].mxu0  ;;  %v778_v47 = vpack.c.bf16 %v761_v41, %v760_v40 }
 0x1da   : > { %v1483_v48 = vpop.f32.mrb[63].mxu0 }
 0x1db   : > { %v726_v49 = vadd.f32 %v1481_v45, %v2058_v2  ;;  %v1484_v50 = vadd.f32 %v1483_v48, %v1482_v46  ;;  %1061 = vmatmul.mubr.bf16.gmra.mrb[56].mxu1 %v778_v47 }
 0x1dc   : > { %1070 = vmatprep.mubr.bf16.mxu1 %v1768_v43 }
 0x1dd   : > { %v729_v51 = vadd.f32 %v1484_v50, %v2058_v2  ;;  %v762_v52 = vmax.f32 %v726_v49, 0.0 }
 0x1df   : > { %v763_v53 = vmax.f32 %v729_v51, 0.0 }
 0x1e1   : > { %v779_v54 = vpack.c.bf16 %v763_v53, %v762_v52 }
 0x1e3   : > { %1071 = vmatmul.mubr.bf16.gmra.mrb[60].mxu1 %v779_v54 }
 0x23e   : > { %v922_v43 = vpop.f32.mrb[0].mxu1 }
 0x23f   : > { %v923_v2 = vadd.f32 %v922_v43, %v2110_v60  ;;  %v924_v62 = vpop.f32.mrb[1].mxu1 }
 0x240   : > { %v925_v63 = vadd.f32 %v924_v62, %v2112_v61  ;;  %v926_v0 = vpop.f32.mrb[2].mxu1 }
 0x241   : > { %v1081_v1 = vmax.f32 %v923_v2, 0.0  ;;  %v927_v3 = vadd.f32 %v926_v0, %v2110_v60  ;;  %v928_v4 = vpop.f32.mrb[3].mxu1 }
 0x242   : > { %v1082_v5 = vmax.f32 %v925_v63, 0.0  ;;  %v929_v6 = vadd.f32 %v928_v4, %v2112_v61 }
 0x243   : > { %1145 = vst [vmem:[%s2120_s12] sm:$0xff] %v1081_v1  ;;  %v1083_v7 = vmax.f32 %v927_v3, 0.0 }
 0x244   : > { %1146 = vst [vmem:[%s2120_s12 + $0x8] sm:$0xff] %v1082_v5  ;;  %v1084_v8 = vmax.f32 %v929_v6, 0.0 }
 0x245   : > { %1147 = vst [vmem:[%s2120_s12 + $0x10] sm:$0xff] %v1083_v7 }
 0x246   : > { %1148 = vst [vmem:[%s2120_s12 + $0x18] sm:$0xff] %v1084_v8  ;;  %v932_v9 = vpop.f32.mrb[4].mxu1 }
 0x247   : > { %v933_v10 = vadd.f32 %v932_v9, %v2110_v60  ;;  %v934_v11 = vpop.f32.mrb[5].mxu1 }
 0x248   : > { %v935_v12 = vadd.f32 %v934_v11, %v2112_v61  ;;  %v936_v13 = vpop.f32.mrb[6].mxu1 }
 0x249   : > { %v1085_v14 = vmax.f32 %v933_v10, 0.0  ;;  %v937_v15 = vadd.f32 %v936_v13, %v2110_v60  ;;  %v938_v16 = vpop.f32.mrb[7].mxu1 }
 0x24a   : > { %v1086_v17 = vmax.f32 %v935_v12, 0.0  ;;  %v939_v18 = vadd.f32 %v938_v16, %v2112_v61 }
 0x24b   : > { %1149 = vst [vmem:[%s2120_s12 + $0x20] sm:$0xff] %v1085_v14  ;;  %v1087_v19 = vmax.f32 %v937_v15, 0.0 }
 0x24c   : > { %1150 = vst [vmem:[%s2120_s12 + $0x28] sm:$0xff] %v1086_v17  ;;  %v1088_v20 = vmax.f32 %v939_v18, 0.0 }
 0x24d   : > { %1151 = vst [vmem:[%s2120_s12 + $0x30] sm:$0xff] %v1087_v19 }
 0x24e   : > { %1152 = vst [vmem:[%s2120_s12 + $0x38] sm:$0xff] %v1088_v20  ;;  %v942_v21 = vpop.f32.mrb[8].mxu1 }
 0x24f   : > { %v943_v22 = vadd.f32 %v942_v21, %v2110_v60  ;;  %v944_v23 = vpop.f32.mrb[9].mxu1 }
 0x250   : > { %v945_v24 = vadd.f32 %v944_v23, %v2112_v61  ;;  %v946_v25 = vpop.f32.mrb[10].mxu1 }
 0x251   : > { %v1089_v26 = vmax.f32 %v943_v22, 0.0  ;;  %v947_v27 = vadd.f32 %v946_v25, %v2110_v60  ;;  %v948_v28 = vpop.f32.mrb[11].mxu1 }
 0x252   : > { %v1090_v29 = vmax.f32 %v945_v24, 0.0  ;;  %v949_v30 = vadd.f32 %v948_v28, %v2112_v61 }
 0x253   : > { %1153 = vst [vmem:[%s2120_s12 + $0x40] sm:$0xff] %v1089_v26  ;;  %v1091_v31 = vmax.f32 %v947_v27, 0.0 }
 0x254   : > { %1154 = vst [vmem:[%s2120_s12 + $0x48] sm:$0xff] %v1090_v29  ;;  %v1092_v32 = vmax.f32 %v949_v30, 0.0 }
 0x255   : > { %1155 = vst [vmem:[%s2120_s12 + $0x50] sm:$0xff] %v1091_v31 }
 0x256   : > { %1156 = vst [vmem:[%s2120_s12 + $0x58] sm:$0xff] %v1092_v32  ;;  %v952_v33 = vpop.f32.mrb[12].mxu1 }
 0x257   : > { %v953_v34 = vadd.f32 %v952_v33, %v2110_v60  ;;  %v954_v35 = vpop.f32.mrb[13].mxu1 }
 0x258   : > { %v955_v36 = vadd.f32 %v954_v35, %v2112_v61  ;;  %v956_v37 = vpop.f32.mrb[14].mxu1 }
 0x259   : > { %v1093_v38 = vmax.f32 %v953_v34, 0.0  ;;  %v957_v39 = vadd.f32 %v956_v37, %v2110_v60  ;;  %v958_v40 = vpop.f32.mrb[15].mxu1 }
 0x25a   : > { %v1094_v41 = vmax.f32 %v955_v36, 0.0  ;;  %v959_v42 = vadd.f32 %v958_v40, %v2112_v61 }
 0x25b   : > { %1157 = vst [vmem:[%s2120_s12 + $0x60] sm:$0xff] %v1093_v38  ;;  %v1095_v44 = vmax.f32 %v957_v39, 0.0 }
 0x25c   : > { %1158 = vst [vmem:[%s2120_s12 + $0x68] sm:$0xff] %v1094_v41  ;;  %v1096_v45 = vmax.f32 %v959_v42, 0.0 }
 0x25d   : > { %1159 = vst [vmem:[%s2120_s12 + $0x70] sm:$0xff] %v1095_v44 }
 0x25e   : > { %1160 = vst [vmem:[%s2120_s12 + $0x78] sm:$0xff] %v1096_v45  ;;  %v962_v46 = vpop.f32.mrb[16].mxu1 }
 0x25f   : > { %v963_v47 = vadd.f32 %v962_v46, %v2110_v60  ;;  %v964_v48 = vpop.f32.mrb[17].mxu1 }
 0x260   : > { %v965_v49 = vadd.f32 %v964_v48, %v2112_v61  ;;  %v966_v50 = vpop.f32.mrb[18].mxu1 }
 0x261   : > { %v1097_v51 = vmax.f32 %v963_v47, 0.0  ;;  %v967_v52 = vadd.f32 %v966_v50, %v2110_v60  ;;  %v968_v53 = vpop.f32.mrb[19].mxu1 }
 0x262   : > { %v1098_v54 = vmax.f32 %v965_v49, 0.0  ;;  %v969_v55 = vadd.f32 %v968_v53, %v2112_v61 }
 0x263   : > { %1161 = vst [vmem:[%s2120_s12 + $0x80] sm:$0xff] %v1097_v51  ;;  %v1099_v56 = vmax.f32 %v967_v52, 0.0 }
 0x264   : > { %1162 = vst [vmem:[%s2120_s12 + $0x88] sm:$0xff] %v1098_v54  ;;  %v1100_v57 = vmax.f32 %v969_v55, 0.0 }
 0x265   : > { %1163 = vst [vmem:[%s2120_s12 + $0x90] sm:$0xff] %v1099_v56 }
 0x266   : > { %1164 = vst [vmem:[%s2120_s12 + $0x98] sm:$0xff] %v1100_v57  ;;  %v972_v58 = vpop.f32.mrb[20].mxu1 }
 0x267   : > { %v973_v59 = vadd.f32 %v972_v58, %v2110_v60  ;;  %v974_v43 = vpop.f32.mrb[21].mxu1 }
 0x268   : > { %v975_v2 = vadd.f32 %v974_v43, %v2112_v61  ;;  %v976_v62 = vpop.f32.mrb[22].mxu1 }
 0x269   : > { %v1101_v63 = vmax.f32 %v973_v59, 0.0  ;;  %v977_v0 = vadd.f32 %v976_v62, %v2110_v60  ;;  %v978_v1 = vpop.f32.mrb[23].mxu1 }
 0x26a   : > { %v1102_v3 = vmax.f32 %v975_v2, 0.0  ;;  %v979_v4 = vadd.f32 %v978_v1, %v2112_v61 }
 0x26b   : > { %1165 = vst [vmem:[%s2120_s12 + $0xa0] sm:$0xff] %v1101_v63  ;;  %v1103_v5 = vmax.f32 %v977_v0, 0.0 }
 0x26c   : > { %1166 = vst [vmem:[%s2120_s12 + $0xa8] sm:$0xff] %v1102_v3  ;;  %v1104_v6 = vmax.f32 %v979_v4, 0.0 }
 0x26d   : > { %1167 = vst [vmem:[%s2120_s12 + $0xb0] sm:$0xff] %v1103_v5 }
 0x26e   : > { %1168 = vst [vmem:[%s2120_s12 + $0xb8] sm:$0xff] %v1104_v6  ;;  %v982_v7 = vpop.f32.mrb[24].mxu1 }
 0x26f   : > { %v983_v8 = vadd.f32 %v982_v7, %v2110_v60  ;;  %v984_v9 = vpop.f32.mrb[25].mxu1 }
 0x270   : > { %v985_v10 = vadd.f32 %v984_v9, %v2112_v61  ;;  %v986_v11 = vpop.f32.mrb[26].mxu1 }
 0x271   : > { %v1105_v12 = vmax.f32 %v983_v8, 0.0  ;;  %v987_v13 = vadd.f32 %v986_v11, %v2110_v60  ;;  %v988_v14 = vpop.f32.mrb[27].mxu1 }
 0x272   : > { %v1106_v15 = vmax.f32 %v985_v10, 0.0  ;;  %v989_v16 = vadd.f32 %v988_v14, %v2112_v61 }
 0x273   : > { %1169 = vst [vmem:[%s2120_s12 + $0xc0] sm:$0xff] %v1105_v12  ;;  %v1107_v17 = vmax.f32 %v987_v13, 0.0 }
 0x274   : > { %1170 = vst [vmem:[%s2120_s12 + $0xc8] sm:$0xff] %v1106_v15  ;;  %v1108_v18 = vmax.f32 %v989_v16, 0.0 }
 0x275   : > { %1171 = vst [vmem:[%s2120_s12 + $0xd0] sm:$0xff] %v1107_v17 }
 0x276   : > { %1172 = vst [vmem:[%s2120_s12 + $0xd8] sm:$0xff] %v1108_v18  ;;  %v992_v19 = vpop.f32.mrb[28].mxu1 }
 0x277   : > { %v993_v20 = vadd.f32 %v992_v19, %v2110_v60  ;;  %v994_v21 = vpop.f32.mrb[29].mxu1 }
 0x278   : > { %v995_v22 = vadd.f32 %v994_v21, %v2112_v61  ;;  %v996_v23 = vpop.f32.mrb[30].mxu1 }
 0x279   : > { %v1109_v24 = vmax.f32 %v993_v20, 0.0  ;;  %v997_v25 = vadd.f32 %v996_v23, %v2110_v60  ;;  %v998_v26 = vpop.f32.mrb[31].mxu1 }
 0x27a   : > { %v1110_v27 = vmax.f32 %v995_v22, 0.0  ;;  %v999_v28 = vadd.f32 %v998_v26, %v2112_v61 }
 0x27b   : > { %1173 = vst [vmem:[%s2120_s12 + $0xe0] sm:$0xff] %v1109_v24  ;;  %v1111_v29 = vmax.f32 %v997_v25, 0.0 }
 0x27c   : > { %1174 = vst [vmem:[%s2120_s12 + $0xe8] sm:$0xff] %v1110_v27  ;;  %v1112_v30 = vmax.f32 %v999_v28, 0.0 }
 0x27d   : > { %1175 = vst [vmem:[%s2120_s12 + $0xf0] sm:$0xff] %v1111_v29 }
 0x27e   : > { %1176 = vst [vmem:[%s2120_s12 + $0xf8] sm:$0xff] %v1112_v30  ;;  %v1002_v31 = vpop.f32.mrb[32].mxu1 }
 0x27f   : > { %v1003_v32 = vadd.f32 %v1002_v31, %v2110_v60  ;;  %v1004_v33 = vpop.f32.mrb[33].mxu1 }
 0x280   : > { %v1005_v34 = vadd.f32 %v1004_v33, %v2112_v61  ;;  %v1006_v35 = vpop.f32.mrb[34].mxu1 }
 0x281   : > { %v1113_v36 = vmax.f32 %v1003_v32, 0.0  ;;  %v1007_v37 = vadd.f32 %v1006_v35, %v2110_v60  ;;  %v1008_v38 = vpop.f32.mrb[35].mxu1 }
 0x282   : > { %v1114_v39 = vmax.f32 %v1005_v34, 0.0  ;;  %v1009_v40 = vadd.f32 %v1008_v38, %v2112_v61 }
 0x283   : > { %1177 = vst [vmem:[%s2120_s12 + $0x100] sm:$0xff] %v1113_v36  ;;  %v1115_v41 = vmax.f32 %v1007_v37, 0.0 }
 0x284   : > { %1178 = vst [vmem:[%s2120_s12 + $0x108] sm:$0xff] %v1114_v39  ;;  %v1116_v42 = vmax.f32 %v1009_v40, 0.0 }
 0x285   : > { %1179 = vst [vmem:[%s2120_s12 + $0x110] sm:$0xff] %v1115_v41 }
 0x286   : > { %1180 = vst [vmem:[%s2120_s12 + $0x118] sm:$0xff] %v1116_v42  ;;  %v1012_v44 = vpop.f32.mrb[36].mxu1 }
 0x287   : > { %v1013_v45 = vadd.f32 %v1012_v44, %v2110_v60  ;;  %v1014_v46 = vpop.f32.mrb[37].mxu1 }
 0x288   : > { %v1015_v47 = vadd.f32 %v1014_v46, %v2112_v61  ;;  %v1016_v48 = vpop.f32.mrb[38].mxu1 }
 0x289   : > { %v1117_v49 = vmax.f32 %v1013_v45, 0.0  ;;  %v1017_v50 = vadd.f32 %v1016_v48, %v2110_v60  ;;  %v1018_v51 = vpop.f32.mrb[39].mxu1 }
 0x28a   : > { %v1118_v52 = vmax.f32 %v1015_v47, 0.0  ;;  %v1019_v53 = vadd.f32 %v1018_v51, %v2112_v61 }
 0x28b   : > { %1181 = vst [vmem:[%s2120_s12 + $0x120] sm:$0xff] %v1117_v49  ;;  %v1119_v54 = vmax.f32 %v1017_v50, 0.0 }
 0x28c   : > { %1182 = vst [vmem:[%s2120_s12 + $0x128] sm:$0xff] %v1118_v52  ;;  %v1120_v55 = vmax.f32 %v1019_v53, 0.0 }
 0x28d   : > { %1183 = vst [vmem:[%s2120_s12 + $0x130] sm:$0xff] %v1119_v54 }
 0x28e   : > { %1184 = vst [vmem:[%s2120_s12 + $0x138] sm:$0xff] %v1120_v55  ;;  %v1022_v56 = vpop.f32.mrb[40].mxu1 }
 0x28f   : > { %v1023_v57 = vadd.f32 %v1022_v56, %v2110_v60  ;;  %v1024_v58 = vpop.f32.mrb[41].mxu1 }
 0x290   : > { %v1025_v59 = vadd.f32 %v1024_v58, %v2112_v61  ;;  %v1026_v43 = vpop.f32.mrb[42].mxu1 }
 0x291   : > { %v1121_v2 = vmax.f32 %v1023_v57, 0.0  ;;  %v1027_v62 = vadd.f32 %v1026_v43, %v2110_v60  ;;  %v1028_v63 = vpop.f32.mrb[43].mxu1 }
 0x292   : > { %v1122_v0 = vmax.f32 %v1025_v59, 0.0  ;;  %v1029_v1 = vadd.f32 %v1028_v63, %v2112_v61 }
 0x293   : > { %1185 = vst [vmem:[%s2120_s12 + $0x140] sm:$0xff] %v1121_v2  ;;  %v1123_v3 = vmax.f32 %v1027_v62, 0.0 }
 0x294   : > { %1186 = vst [vmem:[%s2120_s12 + $0x148] sm:$0xff] %v1122_v0  ;;  %v1124_v4 = vmax.f32 %v1029_v1, 0.0 }
 0x295   : > { %1187 = vst [vmem:[%s2120_s12 + $0x150] sm:$0xff] %v1123_v3 }
 0x296   : > { %1188 = vst [vmem:[%s2120_s12 + $0x158] sm:$0xff] %v1124_v4  ;;  %v1032_v5 = vpop.f32.mrb[44].mxu1 }
 0x297   : > { %v1033_v6 = vadd.f32 %v1032_v5, %v2110_v60  ;;  %v1034_v7 = vpop.f32.mrb[45].mxu1 }
 0x298   : > { %v1035_v8 = vadd.f32 %v1034_v7, %v2112_v61  ;;  %v1036_v9 = vpop.f32.mrb[46].mxu1 }
 0x299   : > { %v1125_v10 = vmax.f32 %v1033_v6, 0.0  ;;  %v1037_v11 = vadd.f32 %v1036_v9, %v2110_v60  ;;  %v1038_v12 = vpop.f32.mrb[47].mxu1 }
 0x29a   : > { %v1126_v13 = vmax.f32 %v1035_v8, 0.0  ;;  %v1039_v14 = vadd.f32 %v1038_v12, %v2112_v61 }
 0x29b   : > { %1189 = vst [vmem:[%s2120_s12 + $0x160] sm:$0xff] %v1125_v10  ;;  %v1127_v15 = vmax.f32 %v1037_v11, 0.0 }
 0x29c   : > { %1190 = vst [vmem:[%s2120_s12 + $0x168] sm:$0xff] %v1126_v13  ;;  %v1128_v16 = vmax.f32 %v1039_v14, 0.0 }
 0x29d   : > { %1191 = vst [vmem:[%s2120_s12 + $0x170] sm:$0xff] %v1127_v15 }
 0x29e   : > { %1192 = vst [vmem:[%s2120_s12 + $0x178] sm:$0xff] %v1128_v16  ;;  %v1042_v17 = vpop.f32.mrb[48].mxu1 }
 0x29f   : > { %v1043_v18 = vadd.f32 %v1042_v17, %v2110_v60  ;;  %v1044_v19 = vpop.f32.mrb[49].mxu1 }
 0x2a0   : > { %v1045_v20 = vadd.f32 %v1044_v19, %v2112_v61  ;;  %v1046_v21 = vpop.f32.mrb[50].mxu1 }
 0x2a1   : > { %v1129_v22 = vmax.f32 %v1043_v18, 0.0  ;;  %v1047_v23 = vadd.f32 %v1046_v21, %v2110_v60  ;;  %v1048_v24 = vpop.f32.mrb[51].mxu1 }
 0x2a2   : > { %v1130_v25 = vmax.f32 %v1045_v20, 0.0  ;;  %v1049_v26 = vadd.f32 %v1048_v24, %v2112_v61 }
 0x2a3   : > { %1193 = vst [vmem:[%s2120_s12 + $0x180] sm:$0xff] %v1129_v22  ;;  %v1131_v27 = vmax.f32 %v1047_v23, 0.0 }
 0x2a4   : > { %1194 = vst [vmem:[%s2120_s12 + $0x188] sm:$0xff] %v1130_v25  ;;  %v1132_v28 = vmax.f32 %v1049_v26, 0.0 }
 0x2a5   : > { %1195 = vst [vmem:[%s2120_s12 + $0x190] sm:$0xff] %v1131_v27 }
 0x2a6   : > { %1196 = vst [vmem:[%s2120_s12 + $0x198] sm:$0xff] %v1132_v28  ;;  %v1052_v29 = vpop.f32.mrb[52].mxu1 }
 0x2a7   : > { %v1053_v30 = vadd.f32 %v1052_v29, %v2110_v60  ;;  %v1054_v31 = vpop.f32.mrb[53].mxu1 }
 0x2a8   : > { %v1055_v32 = vadd.f32 %v1054_v31, %v2112_v61  ;;  %v1056_v33 = vpop.f32.mrb[54].mxu1 }
 0x2a9   : > { %v1133_v34 = vmax.f32 %v1053_v30, 0.0  ;;  %v1057_v35 = vadd.f32 %v1056_v33, %v2110_v60  ;;  %v1058_v36 = vpop.f32.mrb[55].mxu1 }
 0x2aa   : > { %v1134_v37 = vmax.f32 %v1055_v32, 0.0  ;;  %v1059_v38 = vadd.f32 %v1058_v36, %v2112_v61 }
 0x2ab   : > { %1197 = vst [vmem:[%s2120_s12 + $0x1a0] sm:$0xff] %v1133_v34  ;;  %v1135_v39 = vmax.f32 %v1057_v35, 0.0 }
 0x2ac   : > { %1198 = vst [vmem:[%s2120_s12 + $0x1a8] sm:$0xff] %v1134_v37  ;;  %v1136_v40 = vmax.f32 %v1059_v38, 0.0 }
 0x2ad   : > { %1199 = vst [vmem:[%s2120_s12 + $0x1b0] sm:$0xff] %v1135_v39 }
 0x2ae   : > { %1200 = vst [vmem:[%s2120_s12 + $0x1b8] sm:$0xff] %v1136_v40  ;;  %v1062_v41 = vpop.f32.mrb[56].mxu1 }
 0x2af   : > { %v1063_v42 = vadd.f32 %v1062_v41, %v2110_v60  ;;  %v1064_v44 = vpop.f32.mrb[57].mxu1 }
 0x2b0   : > { %v1065_v45 = vadd.f32 %v1064_v44, %v2112_v61  ;;  %v1066_v46 = vpop.f32.mrb[58].mxu1 }
 0x2b1   : > { %v1137_v47 = vmax.f32 %v1063_v42, 0.0  ;;  %v1067_v48 = vadd.f32 %v1066_v46, %v2110_v60  ;;  %v1068_v49 = vpop.f32.mrb[59].mxu1 }
 0x2b2   : > { %v1138_v50 = vmax.f32 %v1065_v45, 0.0  ;;  %v1069_v51 = vadd.f32 %v1068_v49, %v2112_v61 }
 0x2b3   : > { %1201 = vst [vmem:[%s2120_s12 + $0x1c0] sm:$0xff] %v1137_v47  ;;  %v1139_v52 = vmax.f32 %v1067_v48, 0.0 }
 0x2b4   : > { %1202 = vst [vmem:[%s2120_s12 + $0x1c8] sm:$0xff] %v1138_v50  ;;  %v1140_v53 = vmax.f32 %v1069_v51, 0.0 }
 0x2b5   : > { %1203 = vst [vmem:[%s2120_s12 + $0x1d0] sm:$0xff] %v1139_v52 }
 0x2b6   : > { %1204 = vst [vmem:[%s2120_s12 + $0x1d8] sm:$0xff] %v1140_v53  ;;  %v1072_v54 = vpop.f32.mrb[60].mxu1 }
 0x2b7   : > { %v1073_v55 = vadd.f32 %v1072_v54, %v2110_v60  ;;  %v1074_v56 = vpop.f32.mrb[61].mxu1 }
 0x2b8   : > { %v1075_v57 = vadd.f32 %v1074_v56, %v2112_v61  ;;  %v1076_v58 = vpop.f32.mrb[62].mxu1 }
 0x2b9   : > { %v1141_v59 = vmax.f32 %v1073_v55, 0.0  ;;  %v1077_v43 = vadd.f32 %v1076_v58, %v2110_v60  ;;  %v1078_v2 = vpop.f32.mrb[63].mxu1 }
 0x2ba   : > { %v1142_v62 = vmax.f32 %v1075_v57, 0.0  ;;  %v1079_v63 = vadd.f32 %v1078_v2, %v2112_v61 }
 0x2bb   : > { %1205 = vst [vmem:[%s2120_s12 + $0x1e0] sm:$0xff] %v1141_v59  ;;  %v1143_v0 = vmax.f32 %v1077_v43, 0.0 }
 0x2bc   : > { %1206 = vst [vmem:[%s2120_s12 + $0x1e8] sm:$0xff] %v1142_v62  ;;  %v1144_v1 = vmax.f32 %v1079_v63, 0.0 }
 0x2bd   : > { %1207 = vst [vmem:[%s2120_s12 + $0x1f0] sm:$0xff] %v1143_v0 }
 0x2be   : > { %1208 = vst [vmem:[%s2120_s12 + $0x1f8] sm:$0xff] %v1144_v1 }
 0x2bf   : > { %1700 = shalt.err (!%p1697_p2)
}
 0x2c0   : > { %s1701_s6 = scalar_lea.hbm %s2248_s11, 8192  ;;  %s1705_s10 = scalar_lea.hbm %s2302_s5, 16384 }
 0x2c1   : > { %p1702_p13 = scmp.ne.s32.totalorder %s2248_s11, %s1701_s6  ;;  %p1706_p4 = scmp.lt.u32.totalorder %s2248_s11, %s2302_s5 }
 0x2c2   : > { %p1707_p7 = scmp.lt.u32.totalorder %s1705_s10, %s1701_s6  ;;  %p1709_p11 = scmp.lt.u32.totalorder %s1701_s6, %s2248_s11 }
 0x2c3   : > { %p1703_p6 = pnand %p1702_p13, %p2316_p0 }
 0x2c4   : > { %p1708_p8 = por %p1707_p7, %p1706_p4 }
 0x2c5   : > { %p1704_p10 = pneg %p1703_p6 }
 0x2c6   : > { %p1710_p1 = por %p1709_p11, %p1708_p8 }
 0x2c8   : > { %p1711_p3 = pnand %p1710_p1, %p1704_p10 }
 0x2ca   : > { %1714 = shalt.err (!%p1711_p3)
}
 0x2cb   : > { %s1770_s13 = smov 256   ;;  %s1771_s8 = smov 16  }
 0x2cc   : > { %1495 = dma.vmem_to_hbm [thread:$0]  (%p2316_p0), %s2250_s29, 8192, %s2248_s11, %s1210_s22, %s1770_s13, %s1770_s13, %s1771_s8  }
 0x2cd PF: > { %s1239_s9 = sand.u32 1, %s1745_s18   ;;  %p2317_p5 = scmp.ne.s32.totalorder %s2307_s25, 0 }
 0x2ce   : > { %p2318_p9 = scmp.ge.s32.totalorder %s1757_s21, 2  ;;  %s1240_s14 = scalar_lea.sflag [#allocation4], %s1239_s9 }
 0x2d0   : > { %p1509_p12 = pnand %p2318_p9, %p2317_p5 }
 0x2d2   : > { %1740 = dma.done.wait (!%p1509_p12), %s1240_s14, 8192  }
 0x2d3   : > { %1742 = vsyncadd (!%p1509_p12), %s1240_s14, 4294959104  ;;  %p19_p2 = scmp.ge.s32.totalorder %s1912_s16, 4   ;;  %s2319_s18 = smov %s1749_s19 }
 0x2d4   : > { %s2320_s19 = smov %s1753_s20  ;;  %s2321_s20 = smov %s1921_s27 }
 0x2d5   : > { %s2322_s21 = smov %s1912_s16  ;;  %21 = sbr.rel (!%p19_p2) target bundleno = 6 (0x6), region = 93 }
 0x2dc   :  { %1245 = vsyncpa [#allocation3], 1 }
 0x2dd   :  { %1247 = vsyncpa [#allocation3 + $0x1], 1 }
 0x2de   :  { %1248 = vsyncpa [#allocation6], 1 }
 0x2df   :  { %1249 = vsyncpa [#allocation4], 1 }
 0x2e0   :  { %1251 = vsyncpa [#allocation4 + $0x1], 1 }

</bundles_post_ra>
